<compile_context>
chip_gen: v6e
topology: v6e:2x2x1
jax: 0.10.0
libtpu: 0.0.40
codegen_flags: <defaults>
</compile_context>

<pallas_src>
import functools

import jax
import jax.numpy as jnp
from jax.experimental import pallas as pl
from jax.experimental.pallas import tpu as pltpu


def _leaky_relu(x, slope=0.2):
    return jnp.where(x > 0, x, slope * x)


# ----------------------------------------------------------------------------
# In-kernel helper: 3x3 same-padding conv on a flat (Cin, H*W) activation
# via 9 shifted-tap accumulating matmuls (no im2col materialization).
# ----------------------------------------------------------------------------
def _conv3x3_taps(x_f32, w_ref, b_ref, row, col, H, W):
    """x_f32: (Cin, HW) f32.  w_ref: (9, Cout, Cin) bf16, k=(dy+1)*3+(dx+1).
    b_ref: (Cout, 1) f32.  row/col: (1, HW) int32 coords.  -> (Cout, HW) f32."""
    HW = x_f32.shape[1]
    C_out = w_ref.shape[1]
    acc = jnp.zeros((C_out, HW), jnp.float32)
    for dy in (-1, 0, 1):
        for dx in (-1, 0, 1):
            k = (dy + 1) * 3 + (dx + 1)
            s = dy * W + dx
            # shifted[p=(y,x)] = x[y+dy, x+dx]  (flat-lane rotate, XLU slot)
            tap = x_f32 if s == 0 else pltpu.roll(x_f32, shift=(-s) % HW, axis=1)
            conds = []
            if dy < 0:
                conds.append(row >= -dy)
            if dy > 0:
                conds.append(row < H - dy)
            if dx < 0:
                conds.append(col >= -dx)
            if dx > 0:
                conds.append(col < W - dx)
            if conds:
                valid = conds[0]
                for c in conds[1:]:
                    valid = valid & c
                tap = jnp.where(valid, tap, 0.0)   # zero padding at the border
            acc = acc + jnp.dot(w_ref[k], tap.astype(jnp.bfloat16),
                                preferred_element_type=jnp.float32)
    return acc + b_ref[...]


# ----------------------------------------------------------------------------
# Fully fused ResnetBlock_style kernel (one grid step = one batch sample)
# ----------------------------------------------------------------------------
def resblock_kernel(x_ref, row_ref, col_ref, w0_ref, b0_ref, w1_ref, b1_ref,
                    *rest, H, W, learned_shortcut):
    if learned_shortcut:
        ws_ref, o_ref = rest
    else:
        (o_ref,) = rest

    x = x_ref[...].astype(jnp.float32)        # (Cin, HW), lane-dense
    row = row_ref[...]                        # (1, HW) int32
    col = col_ref[...]                        # (1, HW) int32

    # conv_0 + AdaFM_0
    h = _conv3x3_taps(_leaky_relu(x), w0_ref, b0_ref, row, col, H, W)   # (Ch, HW)
    # conv_1 + AdaFM_1  (stays flat (Ch, HW); never reshaped / written to HBM)
    d = _conv3x3_taps(_leaky_relu(h), w1_ref, b1_ref, row, col, H, W)   # (Cout, HW)

    # shortcut (acts on raw x, not lrelu(x)) + residual combine, all f32
    if learned_shortcut:
        xs = jnp.dot(ws_ref[...], x.astype(jnp.bfloat16),
                     preferred_element_type=jnp.float32)
    else:
        xs = x
    o_ref[...] = (xs + 0.1 * d).astype(o_ref.dtype)   # (Cout, HW) lane-dense


# ----------------------------------------------------------------------------
# Wrapper: precompute AdaFM-modulated weights, launch one fused pallas_call
# ----------------------------------------------------------------------------
def resnet_block_style_forward(x_nchw, params):
    N, Cin, H, W = x_nchw.shape
    learned = "convs_w" in params
    Ch = params["conv0_w"].shape[0]       # fhidden
    Cout = params["conv1_w"].shape[0]     # fout
    HW = H * W

    # AdaFM modulation is batch-invariant -> compute once here.
    w0 = params["adafm0_gamma"][:, :, None, None] * params["conv0_w"] \
        + params["adafm0_beta"][:, :, None, None]              # (Ch, Cin, 3, 3)
    w1 = params["adafm1_gamma"][:, :, None, None] * params["conv1_w"] \
        + params["adafm1_beta"][:, :, None, None]              # (Cout, Ch, 3, 3)
    # Tap-stacked layout (9, Cout, Cin) with k = ky*3 + kx, matching the
    # kernel's k = (dy+1)*3 + (dx+1).  bf16 for the MXU, f32 accumulate.
    w0_taps = jnp.transpose(w0, (2, 3, 0, 1)).reshape(9, Ch, Cin).astype(jnp.bfloat16)
    w1_taps = jnp.transpose(w1, (2, 3, 0, 1)).reshape(9, Cout, Ch).astype(jnp.bfloat16)
    b0 = (params["conv0_b"] + params["adafm0_b"]).reshape(Ch, 1).astype(jnp.float32)
    b1 = (params["conv1_b"] + params["adafm1_b"]).reshape(Cout, 1).astype(jnp.float32)

    # Flat lane-dense activation layout; reshape is metadata-only.
    x_flat = x_nchw.reshape(N, Cin, HW)
    # Spatial coordinate maps for the border masks (grid-invariant, tiny).
    row_idx = jnp.repeat(jnp.arange(H, dtype=jnp.int32), W).reshape(1, HW)
    col_idx = jnp.tile(jnp.arange(W, dtype=jnp.int32), H).reshape(1, HW)

    inputs = [x_flat, row_idx, col_idx, w0_taps, b0, w1_taps, b1]
    in_specs = [
        pl.BlockSpec((None, Cin, HW), lambda n: (n, 0, 0)),
        pl.BlockSpec((1, HW), lambda n: (0, 0)),
        pl.BlockSpec((1, HW), lambda n: (0, 0)),
        pl.BlockSpec((9, Ch, Cin), lambda n: (0, 0, 0)),
        pl.BlockSpec((Ch, 1), lambda n: (0, 0)),
        pl.BlockSpec((9, Cout, Ch), lambda n: (0, 0, 0)),
        pl.BlockSpec((Cout, 1), lambda n: (0, 0)),
    ]
    if learned:
        ws_mat = params["convs_w"][:, :, 0, 0].astype(jnp.bfloat16)   # (Cout, Cin)
        inputs.append(ws_mat)
        in_specs.append(pl.BlockSpec((Cout, Cin), lambda n: (0, 0)))

    kern = functools.partial(resblock_kernel, H=H, W=W, learned_shortcut=learned)

    # Per-step VMEM footprint estimate (double-buffered I/O blocks + weights +
    # live f32 activations) -> explicit scoped-VMEM limit.
    bpe = 4
    est = bpe * HW * (2 * Cin + 2 * Cout + Ch + Cout + 3 * max(Cin, Ch))
    est += 4 * (w0_taps.size + w1_taps.size + (Cout * Cin if learned else 0))
    est += 2 << 20
    vmem_limit = int(min(max(est, 32 << 20), 64 << 20))

    out = pl.pallas_call(
        kern,
        out_shape=jax.ShapeDtypeStruct((N, Cout, HW), x_nchw.dtype),
        grid=(N,),
        in_specs=in_specs,
        out_specs=pl.BlockSpec((None, Cout, HW), lambda n: (n, 0, 0)),
        compiler_params=pltpu.CompilerParams(
            dimension_semantics=("parallel",),
            vmem_limit_bytes=vmem_limit),
    )(*inputs)

    return out.reshape(N, Cout, H, W)      # metadata-only reshape, stays NCHW


# ----------------------------------------------------------------------------
# Pure-JAX reference (for correctness check)
# ----------------------------------------------------------------------------
def ref_forward(x, params):
    def conv(inp, w, b, pad):
        y = jax.lax.conv_general_dilated(
            inp, w, (1, 1), ((pad, pad), (pad, pad)),
            dimension_numbers=("NCHW", "OIHW", "NCHW"))
        if b is not None:
            y = y + b[None, :, None, None]
        return y

    w0 = params["adafm0_gamma"][:, :, None, None] * params["conv0_w"] \
        + params["adafm0_beta"][:, :, None, None]
    w1 = params["adafm1_gamma"][:, :, None, None] * params["conv1_w"] \
        + params["adafm1_beta"][:, :, None, None]
    x_s = conv(x, params["convs_w"], None, 0) if "convs_w" in params else x
    dx = _leaky_relu(x)
    dx = conv(dx, w0, params["conv0_b"] + params["adafm0_b"], 1)
    dx = _leaky_relu(dx)
    dx = conv(dx, w1, params["conv1_b"] + params["adafm1_b"], 1)
    return x_s + 0.1 * dx


# ----------------------------------------------------------------------------
# Deterministic synthetic parameters (shapes follow the module __init__)
# ----------------------------------------------------------------------------
def make_params(key, fin, fout, fhidden):
    stdd2 = 0.1
    ks = jax.random.split(key, 10)
    params = {
        "conv0_w": 0.1 * jax.random.normal(ks[0], (fhidden, fin, 3, 3), jnp.float32),
        "conv0_b": 0.1 * jax.random.normal(ks[1], (fhidden,), jnp.float32),
        "adafm0_gamma": stdd2 + stdd2 * jax.random.normal(ks[2], (fhidden, fin), jnp.float32),
        "adafm0_beta": stdd2 + stdd2 * jax.random.normal(ks[3], (fhidden, fin), jnp.float32),
        "adafm0_b": jnp.zeros((fhidden,), jnp.float32),
        "conv1_w": 0.1 * jax.random.normal(ks[4], (fout, fhidden, 3, 3), jnp.float32),
        "conv1_b": 0.1 * jax.random.normal(ks[5], (fout,), jnp.float32),
        "adafm1_gamma": stdd2 + stdd2 * jax.random.normal(ks[6], (fout, fhidden), jnp.float32),
        "adafm1_beta": stdd2 + stdd2 * jax.random.normal(ks[7], (fout, fhidden), jnp.float32),
        "adafm1_b": jnp.zeros((fout,), jnp.float32),
    }
    if fin != fout:   # learned shortcut: conv_s (fout, fin, 1, 1), no bias
        params["convs_w"] = 0.1 * jax.random.normal(ks[8], (fout, fin, 1, 1), jnp.float32)
    return params


if __name__ == "__main__":
    key = jax.random.PRNGKey(0)
    N, H, W = 2, 16, 16
    kx, kp, kx2, kp2 = jax.random.split(key, 4)

    # bf16 MXU operands (f32 accumulate) -> slightly looser tolerance vs f32 ref.
    ATOL = RTOL = 3e-2

    # Case 1: learned shortcut (fin != fout)
    fin, fout = 4, 8
    x = jax.random.normal(kx, (N, fin, H, W), jnp.float32)
    params = make_params(kp, fin, fout, min(fin, fout))
    out = jax.block_until_ready(jax.jit(resnet_block_style_forward)(x, params))
    ref = jax.block_until_ready(ref_forward(x, params))
    assert out.shape == (N, fout, H, W), out.shape
    assert jnp.allclose(out, ref, atol=ATOL, rtol=RTOL), float(jnp.abs(out - ref).max())

    # Case 2: identity shortcut (fin == fout)
    fin2 = fout2 = 8
    x2 = jax.random.normal(kx2, (N, fin2, H, W), jnp.float32)
    params2 = make_params(kp2, fin2, fout2, min(fin2, fout2))
    out2 = jax.block_until_ready(jax.jit(resnet_block_style_forward)(x2, params2))
    ref2 = jax.block_until_ready(ref_forward(x2, params2))
    assert out2.shape == (N, fout2, H, W), out2.shape
    assert jnp.allclose(out2, ref2, atol=ATOL, rtol=RTOL), float(jnp.abs(out2 - ref2).max())

    print("KERNEL_OK")
</pallas_src>

<mosaic_0001>
module attributes {stable_mosaic.version = 11 : i64} {
  func.func @resblock_kernel(%arg0: i32, %arg1: memref<1x4x256xf32, #tpu.memory_space<vmem>>, %arg2: memref<1x256xi32, #tpu.memory_space<vmem>>, %arg3: memref<1x256xi32, #tpu.memory_space<vmem>>, %arg4: memref<9x4x4xbf16, #tpu.memory_space<vmem>>, %arg5: memref<4x1xf32, #tpu.memory_space<vmem>>, %arg6: memref<9x8x4xbf16, #tpu.memory_space<vmem>>, %arg7: memref<8x1xf32, #tpu.memory_space<vmem>>, %arg8: memref<8x4xbf16, #tpu.memory_space<vmem>>, %arg9: memref<1x8x256xf32, #tpu.memory_space<vmem>>) attributes {dimension_semantics = [#tpu.dimension_semantics<parallel>], iteration_bounds = array<i64: 2>, scalar_prefetch = 0 : i64, scratch_operands = 0 : i64, tpu.core_type = #tpu.core_type<tc>, window_params = [{transform_indices = @transform_0, window_bounds = array<i64: 1, 4, 256>}, {pipeline_mode = #tpu.pipeline_mode<synchronous>, transform_indices = @transform_1, window_bounds = array<i64: 1, 256>}, {pipeline_mode = #tpu.pipeline_mode<synchronous>, transform_indices = @transform_2, window_bounds = array<i64: 1, 256>}, {pipeline_mode = #tpu.pipeline_mode<synchronous>, transform_indices = @transform_3, window_bounds = array<i64: 9, 4, 4>}, {pipeline_mode = #tpu.pipeline_mode<synchronous>, transform_indices = @transform_4, window_bounds = array<i64: 4, 1>}, {pipeline_mode = #tpu.pipeline_mode<synchronous>, transform_indices = @transform_5, window_bounds = array<i64: 9, 8, 4>}, {pipeline_mode = #tpu.pipeline_mode<synchronous>, transform_indices = @transform_6, window_bounds = array<i64: 8, 1>}, {pipeline_mode = #tpu.pipeline_mode<synchronous>, transform_indices = @transform_7, window_bounds = array<i64: 8, 4>}, {transform_indices = @transform_8, window_bounds = array<i64: 1, 8, 256>}]} {
    %c0 = arith.constant 0 : index
    %c0_0 = arith.constant 0 : index
    %c0_1 = arith.constant 0 : index
    %0 = vector.load %arg1[%c0, %c0_0, %c0_1] : memref<1x4x256xf32, #tpu.memory_space<vmem>>, vector<1x4x256xf32>
    %1 = vector.shape_cast %0 : vector<1x4x256xf32> to vector<4x256xf32>
    %c0_2 = arith.constant 0 : index
    %c0_3 = arith.constant 0 : index
    %2 = vector.load %arg2[%c0_2, %c0_3] : memref<1x256xi32, #tpu.memory_space<vmem>>, vector<1x256xi32>
    %c0_4 = arith.constant 0 : index
    %c0_5 = arith.constant 0 : index
    %3 = vector.load %arg3[%c0_4, %c0_5] : memref<1x256xi32, #tpu.memory_space<vmem>>, vector<1x256xi32>
    %cst = arith.constant 0.000000e+00 : f32
    %4 = vector.broadcast %cst : f32 to vector<4x256xf32>
    %5 = arith.cmpf ogt, %1, %4 : vector<4x256xf32>
    %cst_6 = arith.constant 2.000000e-01 : f32
    %6 = vector.broadcast %cst_6 : f32 to vector<4x256xf32>
    %7 = arith.mulf %6, %1 : vector<4x256xf32>
    %8 = arith.select %5, %1, %7 : vector<4x256xi1>, vector<4x256xf32>
    %cst_7 = arith.constant 0.000000e+00 : f32
    %9 = vector.broadcast %cst_7 : f32 to vector<4x256xf32>
    %c17_i32 = arith.constant 17 : i32
    %10 = tpu.dynamic_rotate %8 by %c17_i32 dim 1 : vector<4x256xf32>, i32 -> vector<4x256xf32>
    %c1_i32 = arith.constant 1 : i32
    %11 = vector.broadcast %c1_i32 : i32 to vector<1x256xi32>
    %12 = arith.cmpi sge, %2, %11 : vector<1x256xi32>
    %c1_i32_8 = arith.constant 1 : i32
    %13 = vector.broadcast %c1_i32_8 : i32 to vector<1x256xi32>
    %14 = arith.cmpi sge, %3, %13 : vector<1x256xi32>
    %15 = arith.andi %12, %14 : vector<1x256xi1>
    %cst_9 = arith.constant 0.000000e+00 : f32
    %16 = vector.shape_cast %15 : vector<1x256xi1> to vector<1x256xi1>
    %17 = vector.broadcast %16 : vector<1x256xi1> to vector<4x256xi1>
    %18 = vector.broadcast %cst_9 : f32 to vector<4x256xf32>
    %19 = arith.select %17, %10, %18 : vector<4x256xi1>, vector<4x256xf32>
    %c0_10 = arith.constant 0 : index
    %c0_11 = arith.constant 0 : index
    %c0_12 = arith.constant 0 : index
    %20 = vector.load %arg4[%c0_10, %c0_11, %c0_12] : memref<9x4x4xbf16, #tpu.memory_space<vmem>>, vector<1x4x4xbf16>
    %21 = vector.shape_cast %20 : vector<1x4x4xbf16> to vector<4x4xbf16>
    %22 = arith.truncf %19 : vector<4x256xf32> to vector<4x256xbf16>
    %cst_13 = arith.constant dense<0.000000e+00> : vector<4x256xf32>
    %23 = tpu.matmul %21, %22, %cst_13 {dimension_numbers = #tpu.dot_dimension_numbers<[1], [0], [0], [1], [0, 0, 1, 1], [], []>} : vector<4x4xbf16>, vector<4x256xbf16>, vector<4x256xf32> -> vector<4x256xf32>
    %24 = arith.addf %9, %23 : vector<4x256xf32>
    %c16_i32 = arith.constant 16 : i32
    %25 = tpu.dynamic_rotate %8 by %c16_i32 dim 1 : vector<4x256xf32>, i32 -> vector<4x256xf32>
    %c1_i32_14 = arith.constant 1 : i32
    %26 = vector.broadcast %c1_i32_14 : i32 to vector<1x256xi32>
    %27 = arith.cmpi sge, %2, %26 : vector<1x256xi32>
    %cst_15 = arith.constant 0.000000e+00 : f32
    %28 = vector.shape_cast %27 : vector<1x256xi1> to vector<1x256xi1>
    %29 = vector.broadcast %28 : vector<1x256xi1> to vector<4x256xi1>
    %30 = vector.broadcast %cst_15 : f32 to vector<4x256xf32>
    %31 = arith.select %29, %25, %30 : vector<4x256xi1>, vector<4x256xf32>
    %c1 = arith.constant 1 : index
    %c0_16 = arith.constant 0 : index
    %c0_17 = arith.constant 0 : index
    %32 = vector.load %arg4[%c1, %c0_16, %c0_17] : memref<9x4x4xbf16, #tpu.memory_space<vmem>>, vector<1x4x4xbf16>
    %33 = vector.shape_cast %32 : vector<1x4x4xbf16> to vector<4x4xbf16>
    %34 = arith.truncf %31 : vector<4x256xf32> to vector<4x256xbf16>
    %cst_18 = arith.constant dense<0.000000e+00> : vector<4x256xf32>
    %35 = tpu.matmul %33, %34, %cst_18 {dimension_numbers = #tpu.dot_dimension_numbers<[1], [0], [0], [1], [0, 0, 1, 1], [], []>} : vector<4x4xbf16>, vector<4x256xbf16>, vector<4x256xf32> -> vector<4x256xf32>
    %36 = arith.addf %24, %35 : vector<4x256xf32>
    %c15_i32 = arith.constant 15 : i32
    %37 = tpu.dynamic_rotate %8 by %c15_i32 dim 1 : vector<4x256xf32>, i32 -> vector<4x256xf32>
    %c1_i32_19 = arith.constant 1 : i32
    %38 = vector.broadcast %c1_i32_19 : i32 to vector<1x256xi32>
    %39 = arith.cmpi sge, %2, %38 : vector<1x256xi32>
    %c15_i32_20 = arith.constant 15 : i32
    %40 = vector.broadcast %c15_i32_20 : i32 to vector<1x256xi32>
    %41 = arith.cmpi slt, %3, %40 : vector<1x256xi32>
    %42 = arith.andi %39, %41 : vector<1x256xi1>
    %cst_21 = arith.constant 0.000000e+00 : f32
    %43 = vector.shape_cast %42 : vector<1x256xi1> to vector<1x256xi1>
    %44 = vector.broadcast %43 : vector<1x256xi1> to vector<4x256xi1>
    %45 = vector.broadcast %cst_21 : f32 to vector<4x256xf32>
    %46 = arith.select %44, %37, %45 : vector<4x256xi1>, vector<4x256xf32>
    %c2 = arith.constant 2 : index
    %c0_22 = arith.constant 0 : index
    %c0_23 = arith.constant 0 : index
    %47 = vector.load %arg4[%c2, %c0_22, %c0_23] : memref<9x4x4xbf16, #tpu.memory_space<vmem>>, vector<1x4x4xbf16>
    %48 = vector.shape_cast %47 : vector<1x4x4xbf16> to vector<4x4xbf16>
    %49 = arith.truncf %46 : vector<4x256xf32> to vector<4x256xbf16>
    %cst_24 = arith.constant dense<0.000000e+00> : vector<4x256xf32>
    %50 = tpu.matmul %48, %49, %cst_24 {dimension_numbers = #tpu.dot_dimension_numbers<[1], [0], [0], [1], [0, 0, 1, 1], [], []>} : vector<4x4xbf16>, vector<4x256xbf16>, vector<4x256xf32> -> vector<4x256xf32>
    %51 = arith.addf %36, %50 : vector<4x256xf32>
    %c1_i32_25 = arith.constant 1 : i32
    %52 = tpu.dynamic_rotate %8 by %c1_i32_25 dim 1 : vector<4x256xf32>, i32 -> vector<4x256xf32>
    %c1_i32_26 = arith.constant 1 : i32
    %53 = vector.broadcast %c1_i32_26 : i32 to vector<1x256xi32>
    %54 = arith.cmpi sge, %3, %53 : vector<1x256xi32>
    %cst_27 = arith.constant 0.000000e+00 : f32
    %55 = vector.shape_cast %54 : vector<1x256xi1> to vector<1x256xi1>
    %56 = vector.broadcast %55 : vector<1x256xi1> to vector<4x256xi1>
    %57 = vector.broadcast %cst_27 : f32 to vector<4x256xf32>
    %58 = arith.select %56, %52, %57 : vector<4x256xi1>, vector<4x256xf32>
    %c3 = arith.constant 3 : index
    %c0_28 = arith.constant 0 : index
    %c0_29 = arith.constant 0 : index
    %59 = vector.load %arg4[%c3, %c0_28, %c0_29] : memref<9x4x4xbf16, #tpu.memory_space<vmem>>, vector<1x4x4xbf16>
    %60 = vector.shape_cast %59 : vector<1x4x4xbf16> to vector<4x4xbf16>
    %61 = arith.truncf %58 : vector<4x256xf32> to vector<4x256xbf16>
    %cst_30 = arith.constant dense<0.000000e+00> : vector<4x256xf32>
    %62 = tpu.matmul %60, %61, %cst_30 {dimension_numbers = #tpu.dot_dimension_numbers<[1], [0], [0], [1], [0, 0, 1, 1], [], []>} : vector<4x4xbf16>, vector<4x256xbf16>, vector<4x256xf32> -> vector<4x256xf32>
    %63 = arith.addf %51, %62 : vector<4x256xf32>
    %c4 = arith.constant 4 : index
    %c0_31 = arith.constant 0 : index
    %c0_32 = arith.constant 0 : index
    %64 = vector.load %arg4[%c4, %c0_31, %c0_32] : memref<9x4x4xbf16, #tpu.memory_space<vmem>>, vector<1x4x4xbf16>
    %65 = vector.shape_cast %64 : vector<1x4x4xbf16> to vector<4x4xbf16>
    %66 = arith.truncf %8 : vector<4x256xf32> to vector<4x256xbf16>
    %cst_33 = arith.constant dense<0.000000e+00> : vector<4x256xf32>
    %67 = tpu.matmul %65, %66, %cst_33 {dimension_numbers = #tpu.dot_dimension_numbers<[1], [0], [0], [1], [0, 0, 1, 1], [], []>} : vector<4x4xbf16>, vector<4x256xbf16>, vector<4x256xf32> -> vector<4x256xf32>
    %68 = arith.addf %63, %67 : vector<4x256xf32>
    %c255_i32 = arith.constant 255 : i32
    %69 = tpu.dynamic_rotate %8 by %c255_i32 dim 1 : vector<4x256xf32>, i32 -> vector<4x256xf32>
    %c15_i32_34 = arith.constant 15 : i32
    %70 = vector.broadcast %c15_i32_34 : i32 to vector<1x256xi32>
    %71 = arith.cmpi slt, %3, %70 : vector<1x256xi32>
    %cst_35 = arith.constant 0.000000e+00 : f32
    %72 = vector.shape_cast %71 : vector<1x256xi1> to vector<1x256xi1>
    %73 = vector.broadcast %72 : vector<1x256xi1> to vector<4x256xi1>
    %74 = vector.broadcast %cst_35 : f32 to vector<4x256xf32>
    %75 = arith.select %73, %69, %74 : vector<4x256xi1>, vector<4x256xf32>
    %c5 = arith.constant 5 : index
    %c0_36 = arith.constant 0 : index
    %c0_37 = arith.constant 0 : index
    %76 = vector.load %arg4[%c5, %c0_36, %c0_37] : memref<9x4x4xbf16, #tpu.memory_space<vmem>>, vector<1x4x4xbf16>
    %77 = vector.shape_cast %76 : vector<1x4x4xbf16> to vector<4x4xbf16>
    %78 = arith.truncf %75 : vector<4x256xf32> to vector<4x256xbf16>
    %cst_38 = arith.constant dense<0.000000e+00> : vector<4x256xf32>
    %79 = tpu.matmul %77, %78, %cst_38 {dimension_numbers = #tpu.dot_dimension_numbers<[1], [0], [0], [1], [0, 0, 1, 1], [], []>} : vector<4x4xbf16>, vector<4x256xbf16>, vector<4x256xf32> -> vector<4x256xf32>
    %80 = arith.addf %68, %79 : vector<4x256xf32>
    %c241_i32 = arith.constant 241 : i32
    %81 = tpu.dynamic_rotate %8 by %c241_i32 dim 1 : vector<4x256xf32>, i32 -> vector<4x256xf32>
    %c15_i32_39 = arith.constant 15 : i32
    %82 = vector.broadcast %c15_i32_39 : i32 to vector<1x256xi32>
    %83 = arith.cmpi slt, %2, %82 : vector<1x256xi32>
    %c1_i32_40 = arith.constant 1 : i32
    %84 = vector.broadcast %c1_i32_40 : i32 to vector<1x256xi32>
    %85 = arith.cmpi sge, %3, %84 : vector<1x256xi32>
    %86 = arith.andi %83, %85 : vector<1x256xi1>
    %cst_41 = arith.constant 0.000000e+00 : f32
    %87 = vector.shape_cast %86 : vector<1x256xi1> to vector<1x256xi1>
    %88 = vector.broadcast %87 : vector<1x256xi1> to vector<4x256xi1>
    %89 = vector.broadcast %cst_41 : f32 to vector<4x256xf32>
    %90 = arith.select %88, %81, %89 : vector<4x256xi1>, vector<4x256xf32>
    %c6 = arith.constant 6 : index
    %c0_42 = arith.constant 0 : index
    %c0_43 = arith.constant 0 : index
    %91 = vector.load %arg4[%c6, %c0_42, %c0_43] : memref<9x4x4xbf16, #tpu.memory_space<vmem>>, vector<1x4x4xbf16>
    %92 = vector.shape_cast %91 : vector<1x4x4xbf16> to vector<4x4xbf16>
    %93 = arith.truncf %90 : vector<4x256xf32> to vector<4x256xbf16>
    %cst_44 = arith.constant dense<0.000000e+00> : vector<4x256xf32>
    %94 = tpu.matmul %92, %93, %cst_44 {dimension_numbers = #tpu.dot_dimension_numbers<[1], [0], [0], [1], [0, 0, 1, 1], [], []>} : vector<4x4xbf16>, vector<4x256xbf16>, vector<4x256xf32> -> vector<4x256xf32>
    %95 = arith.addf %80, %94 : vector<4x256xf32>
    %c240_i32 = arith.constant 240 : i32
    %96 = tpu.dynamic_rotate %8 by %c240_i32 dim 1 : vector<4x256xf32>, i32 -> vector<4x256xf32>
    %c15_i32_45 = arith.constant 15 : i32
    %97 = vector.broadcast %c15_i32_45 : i32 to vector<1x256xi32>
    %98 = arith.cmpi slt, %2, %97 : vector<1x256xi32>
    %cst_46 = arith.constant 0.000000e+00 : f32
    %99 = vector.shape_cast %98 : vector<1x256xi1> to vector<1x256xi1>
    %100 = vector.broadcast %99 : vector<1x256xi1> to vector<4x256xi1>
    %101 = vector.broadcast %cst_46 : f32 to vector<4x256xf32>
    %102 = arith.select %100, %96, %101 : vector<4x256xi1>, vector<4x256xf32>
    %c7 = arith.constant 7 : index
    %c0_47 = arith.constant 0 : index
    %c0_48 = arith.constant 0 : index
    %103 = vector.load %arg4[%c7, %c0_47, %c0_48] : memref<9x4x4xbf16, #tpu.memory_space<vmem>>, vector<1x4x4xbf16>
    %104 = vector.shape_cast %103 : vector<1x4x4xbf16> to vector<4x4xbf16>
    %105 = arith.truncf %102 : vector<4x256xf32> to vector<4x256xbf16>
    %cst_49 = arith.constant dense<0.000000e+00> : vector<4x256xf32>
    %106 = tpu.matmul %104, %105, %cst_49 {dimension_numbers = #tpu.dot_dimension_numbers<[1], [0], [0], [1], [0, 0, 1, 1], [], []>} : vector<4x4xbf16>, vector<4x256xbf16>, vector<4x256xf32> -> vector<4x256xf32>
    %107 = arith.addf %95, %106 : vector<4x256xf32>
    %c239_i32 = arith.constant 239 : i32
    %108 = tpu.dynamic_rotate %8 by %c239_i32 dim 1 : vector<4x256xf32>, i32 -> vector<4x256xf32>
    %c15_i32_50 = arith.constant 15 : i32
    %109 = vector.broadcast %c15_i32_50 : i32 to vector<1x256xi32>
    %110 = arith.cmpi slt, %2, %109 : vector<1x256xi32>
    %c15_i32_51 = arith.constant 15 : i32
    %111 = vector.broadcast %c15_i32_51 : i32 to vector<1x256xi32>
    %112 = arith.cmpi slt, %3, %111 : vector<1x256xi32>
    %113 = arith.andi %110, %112 : vector<1x256xi1>
    %cst_52 = arith.constant 0.000000e+00 : f32
    %114 = vector.shape_cast %113 : vector<1x256xi1> to vector<1x256xi1>
    %115 = vector.broadcast %114 : vector<1x256xi1> to vector<4x256xi1>
    %116 = vector.broadcast %cst_52 : f32 to vector<4x256xf32>
    %117 = arith.select %115, %108, %116 : vector<4x256xi1>, vector<4x256xf32>
    %c8 = arith.constant 8 : index
    %c0_53 = arith.constant 0 : index
    %c0_54 = arith.constant 0 : index
    %118 = vector.load %arg4[%c8, %c0_53, %c0_54] : memref<9x4x4xbf16, #tpu.memory_space<vmem>>, vector<1x4x4xbf16>
    %119 = vector.shape_cast %118 : vector<1x4x4xbf16> to vector<4x4xbf16>
    %120 = arith.truncf %117 : vector<4x256xf32> to vector<4x256xbf16>
    %cst_55 = arith.constant dense<0.000000e+00> : vector<4x256xf32>
    %121 = tpu.matmul %119, %120, %cst_55 {dimension_numbers = #tpu.dot_dimension_numbers<[1], [0], [0], [1], [0, 0, 1, 1], [], []>} : vector<4x4xbf16>, vector<4x256xbf16>, vector<4x256xf32> -> vector<4x256xf32>
    %122 = arith.addf %107, %121 : vector<4x256xf32>
    %c0_56 = arith.constant 0 : index
    %c0_57 = arith.constant 0 : index
    %123 = vector.load %arg5[%c0_56, %c0_57] : memref<4x1xf32, #tpu.memory_space<vmem>>, vector<4x1xf32>
    %124 = vector.broadcast %123 : vector<4x1xf32> to vector<4x256xf32>
    %125 = arith.addf %122, %124 : vector<4x256xf32>
    %cst_58 = arith.constant 0.000000e+00 : f32
    %126 = vector.broadcast %cst_58 : f32 to vector<4x256xf32>
    %127 = arith.cmpf ogt, %125, %126 : vector<4x256xf32>
    %cst_59 = arith.constant 2.000000e-01 : f32
    %128 = vector.broadcast %cst_59 : f32 to vector<4x256xf32>
    %129 = arith.mulf %128, %125 : vector<4x256xf32>
    %130 = arith.select %127, %125, %129 : vector<4x256xi1>, vector<4x256xf32>
    %cst_60 = arith.constant 0.000000e+00 : f32
    %131 = vector.broadcast %cst_60 : f32 to vector<8x256xf32>
    %c17_i32_61 = arith.constant 17 : i32
    %132 = tpu.dynamic_rotate %130 by %c17_i32_61 dim 1 : vector<4x256xf32>, i32 -> vector<4x256xf32>
    %c1_i32_62 = arith.constant 1 : i32
    %133 = vector.broadcast %c1_i32_62 : i32 to vector<1x256xi32>
    %134 = arith.cmpi sge, %2, %133 : vector<1x256xi32>
    %c1_i32_63 = arith.constant 1 : i32
    %135 = vector.broadcast %c1_i32_63 : i32 to vector<1x256xi32>
    %136 = arith.cmpi sge, %3, %135 : vector<1x256xi32>
    %137 = arith.andi %134, %136 : vector<1x256xi1>
    %cst_64 = arith.constant 0.000000e+00 : f32
    %138 = vector.shape_cast %137 : vector<1x256xi1> to vector<1x256xi1>
    %139 = vector.broadcast %138 : vector<1x256xi1> to vector<4x256xi1>
    %140 = vector.broadcast %cst_64 : f32 to vector<4x256xf32>
    %141 = arith.select %139, %132, %140 : vector<4x256xi1>, vector<4x256xf32>
    %c0_65 = arith.constant 0 : index
    %c0_66 = arith.constant 0 : index
    %c0_67 = arith.constant 0 : index
    %142 = vector.load %arg6[%c0_65, %c0_66, %c0_67] : memref<9x8x4xbf16, #tpu.memory_space<vmem>>, vector<1x8x4xbf16>
    %143 = vector.shape_cast %142 : vector<1x8x4xbf16> to vector<8x4xbf16>
    %144 = arith.truncf %141 : vector<4x256xf32> to vector<4x256xbf16>
    %cst_68 = arith.constant dense<0.000000e+00> : vector<8x256xf32>
    %145 = tpu.matmul %143, %144, %cst_68 {dimension_numbers = #tpu.dot_dimension_numbers<[1], [0], [0], [1], [0, 0, 1, 1], [], []>} : vector<8x4xbf16>, vector<4x256xbf16>, vector<8x256xf32> -> vector<8x256xf32>
    %146 = arith.addf %131, %145 : vector<8x256xf32>
    %c16_i32_69 = arith.constant 16 : i32
    %147 = tpu.dynamic_rotate %130 by %c16_i32_69 dim 1 : vector<4x256xf32>, i32 -> vector<4x256xf32>
    %c1_i32_70 = arith.constant 1 : i32
    %148 = vector.broadcast %c1_i32_70 : i32 to vector<1x256xi32>
    %149 = arith.cmpi sge, %2, %148 : vector<1x256xi32>
    %cst_71 = arith.constant 0.000000e+00 : f32
    %150 = vector.shape_cast %149 : vector<1x256xi1> to vector<1x256xi1>
    %151 = vector.broadcast %150 : vector<1x256xi1> to vector<4x256xi1>
    %152 = vector.broadcast %cst_71 : f32 to vector<4x256xf32>
    %153 = arith.select %151, %147, %152 : vector<4x256xi1>, vector<4x256xf32>
    %c1_72 = arith.constant 1 : index
    %c0_73 = arith.constant 0 : index
    %c0_74 = arith.constant 0 : index
    %154 = vector.load %arg6[%c1_72, %c0_73, %c0_74] : memref<9x8x4xbf16, #tpu.memory_space<vmem>>, vector<1x8x4xbf16>
    %155 = vector.shape_cast %154 : vector<1x8x4xbf16> to vector<8x4xbf16>
    %156 = arith.truncf %153 : vector<4x256xf32> to vector<4x256xbf16>
    %cst_75 = arith.constant dense<0.000000e+00> : vector<8x256xf32>
    %157 = tpu.matmul %155, %156, %cst_75 {dimension_numbers = #tpu.dot_dimension_numbers<[1], [0], [0], [1], [0, 0, 1, 1], [], []>} : vector<8x4xbf16>, vector<4x256xbf16>, vector<8x256xf32> -> vector<8x256xf32>
    %158 = arith.addf %146, %157 : vector<8x256xf32>
    %c15_i32_76 = arith.constant 15 : i32
    %159 = tpu.dynamic_rotate %130 by %c15_i32_76 dim 1 : vector<4x256xf32>, i32 -> vector<4x256xf32>
    %c1_i32_77 = arith.constant 1 : i32
    %160 = vector.broadcast %c1_i32_77 : i32 to vector<1x256xi32>
    %161 = arith.cmpi sge, %2, %160 : vector<1x256xi32>
    %c15_i32_78 = arith.constant 15 : i32
    %162 = vector.broadcast %c15_i32_78 : i32 to vector<1x256xi32>
    %163 = arith.cmpi slt, %3, %162 : vector<1x256xi32>
    %164 = arith.andi %161, %163 : vector<1x256xi1>
    %cst_79 = arith.constant 0.000000e+00 : f32
    %165 = vector.shape_cast %164 : vector<1x256xi1> to vector<1x256xi1>
    %166 = vector.broadcast %165 : vector<1x256xi1> to vector<4x256xi1>
    %167 = vector.broadcast %cst_79 : f32 to vector<4x256xf32>
    %168 = arith.select %166, %159, %167 : vector<4x256xi1>, vector<4x256xf32>
    %c2_80 = arith.constant 2 : index
    %c0_81 = arith.constant 0 : index
    %c0_82 = arith.constant 0 : index
    %169 = vector.load %arg6[%c2_80, %c0_81, %c0_82] : memref<9x8x4xbf16, #tpu.memory_space<vmem>>, vector<1x8x4xbf16>
    %170 = vector.shape_cast %169 : vector<1x8x4xbf16> to vector<8x4xbf16>
    %171 = arith.truncf %168 : vector<4x256xf32> to vector<4x256xbf16>
    %cst_83 = arith.constant dense<0.000000e+00> : vector<8x256xf32>
    %172 = tpu.matmul %170, %171, %cst_83 {dimension_numbers = #tpu.dot_dimension_numbers<[1], [0], [0], [1], [0, 0, 1, 1], [], []>} : vector<8x4xbf16>, vector<4x256xbf16>, vector<8x256xf32> -> vector<8x256xf32>
    %173 = arith.addf %158, %172 : vector<8x256xf32>
    %c1_i32_84 = arith.constant 1 : i32
    %174 = tpu.dynamic_rotate %130 by %c1_i32_84 dim 1 : vector<4x256xf32>, i32 -> vector<4x256xf32>
    %c1_i32_85 = arith.constant 1 : i32
    %175 = vector.broadcast %c1_i32_85 : i32 to vector<1x256xi32>
    %176 = arith.cmpi sge, %3, %175 : vector<1x256xi32>
    %cst_86 = arith.constant 0.000000e+00 : f32
    %177 = vector.shape_cast %176 : vector<1x256xi1> to vector<1x256xi1>
    %178 = vector.broadcast %177 : vector<1x256xi1> to vector<4x256xi1>
    %179 = vector.broadcast %cst_86 : f32 to vector<4x256xf32>
    %180 = arith.select %178, %174, %179 : vector<4x256xi1>, vector<4x256xf32>
    %c3_87 = arith.constant 3 : index
    %c0_88 = arith.constant 0 : index
    %c0_89 = arith.constant 0 : index
    %181 = vector.load %arg6[%c3_87, %c0_88, %c0_89] : memref<9x8x4xbf16, #tpu.memory_space<vmem>>, vector<1x8x4xbf16>
    %182 = vector.shape_cast %181 : vector<1x8x4xbf16> to vector<8x4xbf16>
    %183 = arith.truncf %180 : vector<4x256xf32> to vector<4x256xbf16>
    %cst_90 = arith.constant dense<0.000000e+00> : vector<8x256xf32>
    %184 = tpu.matmul %182, %183, %cst_90 {dimension_numbers = #tpu.dot_dimension_numbers<[1], [0], [0], [1], [0, 0, 1, 1], [], []>} : vector<8x4xbf16>, vector<4x256xbf16>, vector<8x256xf32> -> vector<8x256xf32>
    %185 = arith.addf %173, %184 : vector<8x256xf32>
    %c4_91 = arith.constant 4 : index
    %c0_92 = arith.constant 0 : index
    %c0_93 = arith.constant 0 : index
    %186 = vector.load %arg6[%c4_91, %c0_92, %c0_93] : memref<9x8x4xbf16, #tpu.memory_space<vmem>>, vector<1x8x4xbf16>
    %187 = vector.shape_cast %186 : vector<1x8x4xbf16> to vector<8x4xbf16>
    %188 = arith.truncf %130 : vector<4x256xf32> to vector<4x256xbf16>
    %cst_94 = arith.constant dense<0.000000e+00> : vector<8x256xf32>
    %189 = tpu.matmul %187, %188, %cst_94 {dimension_numbers = #tpu.dot_dimension_numbers<[1], [0], [0], [1], [0, 0, 1, 1], [], []>} : vector<8x4xbf16>, vector<4x256xbf16>, vector<8x256xf32> -> vector<8x256xf32>
    %190 = arith.addf %185, %189 : vector<8x256xf32>
    %c255_i32_95 = arith.constant 255 : i32
    %191 = tpu.dynamic_rotate %130 by %c255_i32_95 dim 1 : vector<4x256xf32>, i32 -> vector<4x256xf32>
    %c15_i32_96 = arith.constant 15 : i32
    %192 = vector.broadcast %c15_i32_96 : i32 to vector<1x256xi32>
    %193 = arith.cmpi slt, %3, %192 : vector<1x256xi32>
    %cst_97 = arith.constant 0.000000e+00 : f32
    %194 = vector.shape_cast %193 : vector<1x256xi1> to vector<1x256xi1>
    %195 = vector.broadcast %194 : vector<1x256xi1> to vector<4x256xi1>
    %196 = vector.broadcast %cst_97 : f32 to vector<4x256xf32>
    %197 = arith.select %195, %191, %196 : vector<4x256xi1>, vector<4x256xf32>
    %c5_98 = arith.constant 5 : index
    %c0_99 = arith.constant 0 : index
    %c0_100 = arith.constant 0 : index
    %198 = vector.load %arg6[%c5_98, %c0_99, %c0_100] : memref<9x8x4xbf16, #tpu.memory_space<vmem>>, vector<1x8x4xbf16>
    %199 = vector.shape_cast %198 : vector<1x8x4xbf16> to vector<8x4xbf16>
    %200 = arith.truncf %197 : vector<4x256xf32> to vector<4x256xbf16>
    %cst_101 = arith.constant dense<0.000000e+00> : vector<8x256xf32>
    %201 = tpu.matmul %199, %200, %cst_101 {dimension_numbers = #tpu.dot_dimension_numbers<[1], [0], [0], [1], [0, 0, 1, 1], [], []>} : vector<8x4xbf16>, vector<4x256xbf16>, vector<8x256xf32> -> vector<8x256xf32>
    %202 = arith.addf %190, %201 : vector<8x256xf32>
    %c241_i32_102 = arith.constant 241 : i32
    %203 = tpu.dynamic_rotate %130 by %c241_i32_102 dim 1 : vector<4x256xf32>, i32 -> vector<4x256xf32>
    %c15_i32_103 = arith.constant 15 : i32
    %204 = vector.broadcast %c15_i32_103 : i32 to vector<1x256xi32>
    %205 = arith.cmpi slt, %2, %204 : vector<1x256xi32>
    %c1_i32_104 = arith.constant 1 : i32
    %206 = vector.broadcast %c1_i32_104 : i32 to vector<1x256xi32>
    %207 = arith.cmpi sge, %3, %206 : vector<1x256xi32>
    %208 = arith.andi %205, %207 : vector<1x256xi1>
    %cst_105 = arith.constant 0.000000e+00 : f32
    %209 = vector.shape_cast %208 : vector<1x256xi1> to vector<1x256xi1>
    %210 = vector.broadcast %209 : vector<1x256xi1> to vector<4x256xi1>
    %211 = vector.broadcast %cst_105 : f32 to vector<4x256xf32>
    %212 = arith.select %210, %203, %211 : vector<4x256xi1>, vector<4x256xf32>
    %c6_106 = arith.constant 6 : index
    %c0_107 = arith.constant 0 : index
    %c0_108 = arith.constant 0 : index
    %213 = vector.load %arg6[%c6_106, %c0_107, %c0_108] : memref<9x8x4xbf16, #tpu.memory_space<vmem>>, vector<1x8x4xbf16>
    %214 = vector.shape_cast %213 : vector<1x8x4xbf16> to vector<8x4xbf16>
    %215 = arith.truncf %212 : vector<4x256xf32> to vector<4x256xbf16>
    %cst_109 = arith.constant dense<0.000000e+00> : vector<8x256xf32>
    %216 = tpu.matmul %214, %215, %cst_109 {dimension_numbers = #tpu.dot_dimension_numbers<[1], [0], [0], [1], [0, 0, 1, 1], [], []>} : vector<8x4xbf16>, vector<4x256xbf16>, vector<8x256xf32> -> vector<8x256xf32>
    %217 = arith.addf %202, %216 : vector<8x256xf32>
    %c240_i32_110 = arith.constant 240 : i32
    %218 = tpu.dynamic_rotate %130 by %c240_i32_110 dim 1 : vector<4x256xf32>, i32 -> vector<4x256xf32>
    %c15_i32_111 = arith.constant 15 : i32
    %219 = vector.broadcast %c15_i32_111 : i32 to vector<1x256xi32>
    %220 = arith.cmpi slt, %2, %219 : vector<1x256xi32>
    %cst_112 = arith.constant 0.000000e+00 : f32
    %221 = vector.shape_cast %220 : vector<1x256xi1> to vector<1x256xi1>
    %222 = vector.broadcast %221 : vector<1x256xi1> to vector<4x256xi1>
    %223 = vector.broadcast %cst_112 : f32 to vector<4x256xf32>
    %224 = arith.select %222, %218, %223 : vector<4x256xi1>, vector<4x256xf32>
    %c7_113 = arith.constant 7 : index
    %c0_114 = arith.constant 0 : index
    %c0_115 = arith.constant 0 : index
    %225 = vector.load %arg6[%c7_113, %c0_114, %c0_115] : memref<9x8x4xbf16, #tpu.memory_space<vmem>>, vector<1x8x4xbf16>
    %226 = vector.shape_cast %225 : vector<1x8x4xbf16> to vector<8x4xbf16>
    %227 = arith.truncf %224 : vector<4x256xf32> to vector<4x256xbf16>
    %cst_116 = arith.constant dense<0.000000e+00> : vector<8x256xf32>
    %228 = tpu.matmul %226, %227, %cst_116 {dimension_numbers = #tpu.dot_dimension_numbers<[1], [0], [0], [1], [0, 0, 1, 1], [], []>} : vector<8x4xbf16>, vector<4x256xbf16>, vector<8x256xf32> -> vector<8x256xf32>
    %229 = arith.addf %217, %228 : vector<8x256xf32>
    %c239_i32_117 = arith.constant 239 : i32
    %230 = tpu.dynamic_rotate %130 by %c239_i32_117 dim 1 : vector<4x256xf32>, i32 -> vector<4x256xf32>
    %c15_i32_118 = arith.constant 15 : i32
    %231 = vector.broadcast %c15_i32_118 : i32 to vector<1x256xi32>
    %232 = arith.cmpi slt, %2, %231 : vector<1x256xi32>
    %c15_i32_119 = arith.constant 15 : i32
    %233 = vector.broadcast %c15_i32_119 : i32 to vector<1x256xi32>
    %234 = arith.cmpi slt, %3, %233 : vector<1x256xi32>
    %235 = arith.andi %232, %234 : vector<1x256xi1>
    %cst_120 = arith.constant 0.000000e+00 : f32
    %236 = vector.shape_cast %235 : vector<1x256xi1> to vector<1x256xi1>
    %237 = vector.broadcast %236 : vector<1x256xi1> to vector<4x256xi1>
    %238 = vector.broadcast %cst_120 : f32 to vector<4x256xf32>
    %239 = arith.select %237, %230, %238 : vector<4x256xi1>, vector<4x256xf32>
    %c8_121 = arith.constant 8 : index
    %c0_122 = arith.constant 0 : index
    %c0_123 = arith.constant 0 : index
    %240 = vector.load %arg6[%c8_121, %c0_122, %c0_123] : memref<9x8x4xbf16, #tpu.memory_space<vmem>>, vector<1x8x4xbf16>
    %241 = vector.shape_cast %240 : vector<1x8x4xbf16> to vector<8x4xbf16>
    %242 = arith.truncf %239 : vector<4x256xf32> to vector<4x256xbf16>
    %cst_124 = arith.constant dense<0.000000e+00> : vector<8x256xf32>
    %243 = tpu.matmul %241, %242, %cst_124 {dimension_numbers = #tpu.dot_dimension_numbers<[1], [0], [0], [1], [0, 0, 1, 1], [], []>} : vector<8x4xbf16>, vector<4x256xbf16>, vector<8x256xf32> -> vector<8x256xf32>
    %244 = arith.addf %229, %243 : vector<8x256xf32>
    %c0_125 = arith.constant 0 : index
    %c0_126 = arith.constant 0 : index
    %245 = vector.load %arg7[%c0_125, %c0_126] : memref<8x1xf32, #tpu.memory_space<vmem>>, vector<8x1xf32>
    %246 = vector.broadcast %245 : vector<8x1xf32> to vector<8x256xf32>
    %247 = arith.addf %244, %246 : vector<8x256xf32>
    %c0_127 = arith.constant 0 : index
    %c0_128 = arith.constant 0 : index
    %248 = vector.load %arg8[%c0_127, %c0_128] : memref<8x4xbf16, #tpu.memory_space<vmem>>, vector<8x4xbf16>
    %249 = arith.truncf %1 : vector<4x256xf32> to vector<4x256xbf16>
    %cst_129 = arith.constant dense<0.000000e+00> : vector<8x256xf32>
    %250 = tpu.matmul %248, %249, %cst_129 {dimension_numbers = #tpu.dot_dimension_numbers<[1], [0], [0], [1], [0, 0, 1, 1], [], []>} : vector<8x4xbf16>, vector<4x256xbf16>, vector<8x256xf32> -> vector<8x256xf32>
    %cst_130 = arith.constant 1.000000e-01 : f32
    %251 = vector.broadcast %cst_130 : f32 to vector<8x256xf32>
    %252 = arith.mulf %251, %247 : vector<8x256xf32>
    %253 = arith.addf %250, %252 : vector<8x256xf32>
    %c0_131 = arith.constant 0 : index
    %c0_132 = arith.constant 0 : index
    %c0_133 = arith.constant 0 : index
    %254 = vector.load %arg9[%c0_131, %c0_132, %c0_133] : memref<1x8x256xf32, #tpu.memory_space<vmem>>, vector<1x8x256xf32>
    %255 = vector.shape_cast %254 : vector<1x8x256xf32> to vector<8x256xf32>
    %256 = vector.shape_cast %253 : vector<8x256xf32> to vector<1x8x256xf32>
    tpu.vector_store %arg9[%c0_131, %c0_132, %c0_133], %256 {strides = array<i32>} : memref<1x8x256xf32, #tpu.memory_space<vmem>>, vector<1x8x256xf32>,
    return
  }
  func.func @transform_0(%arg0: i32) -> (i32, i32, i32) {
    %c0_i32 = arith.constant 0 : i32
    %c0_i32_0 = arith.constant 0 : i32
    %c0_i32_1 = arith.constant 0 : i32
    return %arg0, %c0_i32, %c0_i32_0 : i32, i32, i32
  }
  func.func @transform_1(%arg0: i32) -> (i32, i32) {
    %c0_i32 = arith.constant 0 : i32
    %c0_i32_0 = arith.constant 0 : i32
    %c0_i32_1 = arith.constant 0 : i32
    return %c0_i32, %c0_i32_0 : i32, i32
  }
  func.func @transform_2(%arg0: i32) -> (i32, i32) {
    %c0_i32 = arith.constant 0 : i32
    %c0_i32_0 = arith.constant 0 : i32
    %c0_i32_1 = arith.constant 0 : i32
    return %c0_i32, %c0_i32_0 : i32, i32
  }
  func.func @transform_3(%arg0: i32) -> (i32, i32, i32) {
    %c0_i32 = arith.constant 0 : i32
    %c0_i32_0 = arith.constant 0 : i32
    %c0_i32_1 = arith.constant 0 : i32
    %c0_i32_2 = arith.constant 0 : i32
    return %c0_i32, %c0_i32_0, %c0_i32_1 : i32, i32, i32
  }
  func.func @transform_4(%arg0: i32) -> (i32, i32) {
    %c0_i32 = arith.constant 0 : i32
    %c0_i32_0 = arith.constant 0 : i32
    %c0_i32_1 = arith.constant 0 : i32
    return %c0_i32, %c0_i32_0 : i32, i32
  }
  func.func @transform_5(%arg0: i32) -> (i32, i32, i32) {
    %c0_i32 = arith.constant 0 : i32
    %c0_i32_0 = arith.constant 0 : i32
    %c0_i32_1 = arith.constant 0 : i32
    %c0_i32_2 = arith.constant 0 : i32
    return %c0_i32, %c0_i32_0, %c0_i32_1 : i32, i32, i32
  }
  func.func @transform_6(%arg0: i32) -> (i32, i32) {
    %c0_i32 = arith.constant 0 : i32
    %c0_i32_0 = arith.constant 0 : i32
    %c0_i32_1 = arith.constant 0 : i32
    return %c0_i32, %c0_i32_0 : i32, i32
  }
  func.func @transform_7(%arg0: i32) -> (i32, i32) {
    %c0_i32 = arith.constant 0 : i32
    %c0_i32_0 = arith.constant 0 : i32
    %c0_i32_1 = arith.constant 0 : i32
    return %c0_i32, %c0_i32_0 : i32, i32
  }
  func.func @transform_8(%arg0: i32) -> (i32, i32, i32) {
    %c0_i32 = arith.constant 0 : i32
    %c0_i32_0 = arith.constant 0 : i32
    %c0_i32_1 = arith.constant 0 : i32
    return %arg0, %c0_i32, %c0_i32_0 : i32, i32, i32
  }
}

</mosaic_0001>

<bundles_post_ra>
// kernel: tile.9
= control target key start
LH: loop header
LB: loop body
LE: loop exit
PB: predicated region body
PF: predicated region fallthrough
CT: control target
= control target key end

     0   :  { %s7_s6 = smov 3  ;;  %s21_s9 = smov 3  ;;  %vm4_vm0 = vcmask 130048   ;;  %vm11_vm1 = vcmask 1048448   ;;  %vm18_vm2 = vcmask 917248   ;;  %vm25_vm3 = vcmask 786048   ;;  %s131_s0 = inlined_call_operand.vmem [shape: s32[16,16], index: 0, kind: input, shape index: {}]   ;;  %s132_s1 = inlined_call_operand.vmem [shape: s32[1,256], index: 1, kind: output, shape index: {}]  }
   0x1   :  { %v69_v0 = vld [vmem:[%s131_s0 + $0x7] ss:$8 sm:%s7_s6]   ;;  %s84_s10 = smov 112   ;;  %v71_v1 = vld [vmem:[%s131_s0 + $0x5] ss:$8 sm:%s21_s9]   ;;  %s14_s13 = smov 3 }
   0x2   :  { %9 = vrot.lane.b32.xlu0 %v69_v0, %s84_s10  ;;  %s85_s14 = smov 80   ;;  %v70_v2 = vld [vmem:[%s131_s0 + $0x6] ss:$8 sm:%s14_s13]   ;;  %s28_s17 = smov 3  ;;  %vm32_vm4 = vcmask 654848   ;;  %vm39_vm5 = vcmask 523648  }
   0x3   :  { %23 = vrot.lane.b32.xlu1 %v71_v1, %s85_s14  ;;  %v72_v3 = vld [vmem:[%s131_s0 + $0x4] ss:$8 sm:%s28_s17]   ;;  %s35_s20 = smov 3  ;;  %s42_s21 = smov 3  ;;  %vm46_vm6 = vcmask 392448   ;;  %vm53_vm7 = vcmask 261248  }
   0x4   :  { %s86_s22 = smov 96   ;;  %s87_s23 = smov 64   ;;  %v73_v4 = vld [vmem:[%s131_s0 + $0x3] ss:$8 sm:%s35_s20]   ;;  %v74_v5 = vld [vmem:[%s131_s0 + $0x2] ss:$8 sm:%s42_s21]  }
   0x5   :  { %s2_s26 = smov 3  ;;  %s49_s29 = smov 3 }
   0x6   :  { %16 = vrot.lane.b32.xlu0 %v70_v2, %s86_s22  ;;  %v3_v6 = vld [vmem:[%s131_s0] ss:$8 sm:%s2_s26]   ;;  %s88_s3 = smov 48   ;;  %s89_s4 = smov 32  }
   0x7   :  { %30 = vrot.lane.b32.xlu1 %v72_v3, %s87_s23  ;;  %5 = vst.msk [vmem:[#allocation0] ss:$8 sm:$0x3] %vm4_vm0, %v3_v6   ;;  %v75_v7 = vld [vmem:[%s131_s0 + $0x1] ss:$8 sm:%s49_s29]   ;;  %s90_s0 = smov 16  }
   0xa   :  { %37 = vrot.lane.b32.xlu0 %v73_v4, %s88_s3 }
   0xb   :  { %44 = vrot.lane.b32.xlu1 %v74_v5, %s89_s4 }
   0xe   :  { %51 = vrot.lane.b32.xlu0 %v75_v7, %s90_s0 }
  0x74   :  { %v10_v8 = vpop.permute.xlu0 %9  }
  0x75   :  { %12 = vst.msk [vmem:[#allocation0] ss:$8 sm:$0x3] %vm11_vm1, %v10_v8   ;;  %v24_v9 = vpop.permute.xlu1 %23  }
  0x78   :  { %v17_v10 = vpop.permute.xlu0 %16  }
  0x79   :  { %19 = vst.msk [vmem:[#allocation0] ss:$8 sm:$0x3] %vm18_vm2, %v17_v10   ;;  %v31_v11 = vpop.permute.xlu1 %30  }
  0x7a   :  { %26 = vst.msk [vmem:[#allocation0] ss:$8 sm:$0x3] %vm25_vm3, %v24_v9  }
  0x7b   :  { %33 = vst.msk [vmem:[#allocation0] ss:$8 sm:$0x3] %vm32_vm4, %v31_v11  }
  0x7c   :  { %v38_v12 = vpop.permute.xlu0 %37  }
  0x7d   :  { %40 = vst.msk [vmem:[#allocation0] ss:$8 sm:$0x3] %vm39_vm5, %v38_v12   ;;  %v45_v13 = vpop.permute.xlu1 %44  }
  0x7e   :  { %47 = vst.msk [vmem:[#allocation0] ss:$8 sm:$0x3] %vm46_vm6, %v45_v13  }
  0x80   :  { %v52_v14 = vpop.permute.xlu0 %51  }
  0x81   :  { %54 = vst.msk [vmem:[#allocation0] ss:$8 sm:$0x3] %vm53_vm7, %v52_v14  }
  0x88   :  { %v59_v15 = vld [vmem:[#allocation0] sm:$0x1]  ;;  %v64_v16 = vld [vmem:[#allocation0 + $0x8] sm:$0x1] }
  0x89   :  { %62 = vst [vmem:[%s132_s1] sm:$0x1] %v59_v15  ;;  %76 = vst [vmem:[%s132_s1 + $0x1] sm:$0x1] %v64_v16 }

// kernel: resnet_block_style_forward.1
= control target key start
LH: loop header
LB: loop body
LE: loop exit
PB: predicated region body
PF: predicated region fallthrough
CT: control target
= control target key end

     0   :  { %s1915_s27 = smov 0   ;;  %s2403_s0 = inlined_call_operand.vmem [shape: f32[2,4,256], index: 0, kind: input, shape index: {}]   ;;  %s2404_s1 = inlined_call_operand.vmem [shape: s32[1,256], index: 1, kind: input, shape index: {}]   ;;  %s2405_s2 = inlined_call_operand.vmem [shape: s32[1,256], index: 2, kind: input, shape index: {}]   ;;  %s2406_s3 = inlined_call_operand.vmem [shape: bf16[9,4,4], index: 3, kind: input, shape index: {}]   ;;  %s2407_s4 = inlined_call_operand.vmem [shape: f32[4,1], index: 4, kind: input, shape index: {}]   ;;  %s2408_s5 = inlined_call_operand.vmem [shape: bf16[9,8,4], index: 5, kind: input, shape index: {}]   ;;  %s2409_s6 = inlined_call_operand.vmem [shape: f32[8,1], index: 6, kind: input, shape index: {}]   ;;  %s2410_s7 = inlined_call_operand.vmem [shape: bf16[8,4], index: 7, kind: input, shape index: {}]   ;;  %s2411_s8 = inlined_call_operand.vmem [shape: f32[2,8,256], index: 8, kind: output, shape index: {}]  }
   0x1 LB: > { %s1687_s28 = sadd.s32 4294967295, %s1859_s27   ;;  %p1691_p0 = scmp.ge.s32.totalorder %s1859_s27, 1  ;;  %s1859_s27 = sphi %s1915_s27, %s18_s27  }
   0x2   : > { %p262_p1 = scmp.lt.s32.totalorder %s1859_s27, 3 }
   0x4   : > { %p263_p2 = pnand %p1691_p0, %p262_p1 }
   0x5   : > { %p296_p3 = scmp.lt.s32.totalorder (!%p263_p2), %s1687_s28, 1  ;;  %s1862_s11 = smov (!%p263_p2), 16  }
   0x6   : > { %266 = sbr.rel (%p263_p2) target bundleno = 749 (0x2ed), region = 52  ;;  %s1863_s12 = smov (!%p263_p2), 15  }
   0x7   : > { %s1864_s13 = smov (!%p263_p2), 17   ;;  %s1865_s14 = smov (!%p263_p2), 1  }
   0x8   : > { %s1866_s15 = smov (!%p263_p2), 127   ;;  %s1867_s16 = smov (!%p263_p2), 113  }
   0x9   : > { %s1868_s17 = smov (!%p263_p2), 112   ;;  %s1869_s18 = smov (!%p263_p2), 111  }
   0xb   : > { %v1861_v0 = vmov 0   ;;  %s2527_s28 = smov (!%p296_p3, %s1687_s28), 1  ;;  %v987_v6 = vld [vmem:[%s2407_s4] sm:$0xf]  ;;  %v320_v7 = vlaneseq  ;;  %vm2416_vm9 = vcmask 1041408   ;;  %v2425_v30 = vmov 0 }
   0xc   : > { %411 = vmatprep.mubr.bf16.mxu0 %v1861_v0  ;;  %461 = vmatprep.mubr.bf16.mxu1 %v1861_v0  ;;  %s1752_s29 = sshll.u32 %s2527_s28, 3  ;;  %v1959_v8 = vld [vmem:[%s2405_s2] sm:$0x3]  ;;  %v2433_v35 = vmov 0  ;;  %v1730_v62 = vld [vmem:[%s2408_s5 + $0xc] sm:$0xf] }
   0xd   : > { %1811 = vset.pattern.permute.xlu0 %v1861_v0  ;;  %s300_s10 = scalar_lea.vmem %s2403_s0, %s1752_s29  ;;  %v1964_v9 = vld [vmem:[%s2404_s1] sm:$0x3]  ;;  %vm477_vm1 = vcmp.lt.s32.totalorder %v1959_v8, 15  ;;  %v330_v10 = vshrl.u32 %v320_v7, 7  ;;  %vm326_vm2 = vcmp.ge.s32.totalorder %v1959_v8, 1  ;;  %v1980_v15 = vand.u32 127, %v320_v7 }
   0xe   : > { %v1932_v1 = vld [vmem:[%s300_s10] sm:$0xff]  ;;  %vm325_vm3 = vcmp.ge.s32.totalorder %v1964_v9, 1  ;;  %vm763_vm6 = vcmp.lt.s32.totalorder %v1964_v9, 15  ;;  %v555_v17 = vsel %vm326_vm2, 1, %v1861_v0  ;;  %v687_v25 = vsel %vm477_vm1, 1, %v1861_v0 }
   0xf   : > { %vm310_vm0 = vcmp.gt.f32.partialorder %v1932_v1, 0.0  ;;  %v311_v2 = vmul.f32 0.2, %v1932_v1  ;;  %vm478_vm4 = vmand %vm325_vm3, %vm477_vm1  ;;  %v1973_v11 = vsub.s32 1, %v330_v10  ;;  %v1975_v12 = vsub.s32 0, %v330_v10 }
  0x10   : > { %vm327_vm5 = vmand %vm325_vm3, %vm326_vm2  ;;  %v351_v13 = vsel %vm325_vm3, 1, %v1861_v0  ;;  %v479_v14 = vsel %vm478_vm4, 1, %v1861_v0  ;;  %vm2413_vm8 = vcmp.lt.s32.totalorder %v1980_v15, 16  ;;  %vm2412_vm12 = vcmp.lt.s32.totalorder %v1980_v15, 15  ;;  %v1009_v34 = vld [vmem:[%s2408_s5] sm:$0xf] }
  0x11   : > { %v1937_v3 = vsel %vm310_vm0, %v1932_v1, %v311_v2  ;;  %v328_v16 = vsel %vm327_vm5, 1, %v1861_v0  ;;  %v359_v18 = vrot.slane %v351_v13, %v1973_v11  ;;  %v487_v19 = vrot.slane %v479_v14, %v1973_v11  ;;  %vm764_vm7 = vmand %vm763_vm6, %vm326_vm2 }
  0x12   : > { %v1941_v4 = vcombine.high %v1937_v3, %v1937_v3  ;;  %v355_v20 = vrot.slane %v351_v13, %v1975_v12  ;;  %v336_v21 = vrot.slane %v328_v16, %v1973_v11  ;;  %v332_v22 = vrot.slane %v328_v16, %v1975_v12 }
  0x13   : > { %v563_v23 = vrot.slane %v555_v17, %v1973_v11  ;;  %v483_v24 = vrot.slane %v479_v14, %v1975_v12  ;;  %v559_v26 = vrot.slane %v555_v17, %v1975_v12  ;;  %v765_v27 = vsel %vm764_vm7, 1, %v1861_v0 }
  0x14   : > { %v1771_v5 = vpack.i.bf16 %v1941_v4, %v1937_v3  ;;  %vm2004_vm11 = vcmp.eq.s32.totalorder %v359_v18, 1  ;;  %vm2009_vm13 = vcmp.eq.s32.totalorder %v487_v19, 1  ;;  %vm2013_vm14 = vcmp.eq.s32.totalorder %v355_v20, 1  ;;  %v1696_v19 = vld [vmem:[%s2406_s3 + $0x2] sm:$0x3] }
  0x15   : > { %v2426_v30 = vsel %vm2013_vm14, 4294967295, %v2425_v30  ;;  %vm2017_vm15 = vcmp.eq.s32.totalorder %v336_v21, 1  ;;  %vm2022_vm2 = vcmp.eq.s32.totalorder %v332_v22, 1  ;;  %v695_v33 = vrot.slane %v687_v25, %v1973_v11 }
  0x16   : > { %1772 = vrot.lane.b32.xlu0 %v1771_v5, %s1862_s11  ;;  %1782 = vrot.lane.b32.xlu1 %v1771_v5, %s1863_s12  ;;  %vm2027_vm3 = vcmp.eq.s32.totalorder %v563_v23, 1  ;;  %vm2031_vm4 = vcmp.eq.s32.totalorder %v483_v24, 1  ;;  %v773_v36 = vrot.slane %v765_v27, %v1973_v11  ;;  %v2039_v37 = vsel %vm763_vm6, 1, %v1861_v0 }
  0x17   : > { %v2434_v35 = vsel %vm2031_vm4, 4294967295, %v2433_v35  ;;  %vm2041_vm7 = vcmp.eq.s32.totalorder %v559_v26, 1  ;;  %v627_v41 = vpack.c.bf16 %v1941_v4, %v1941_v4  ;;  %v626_v42 = vpack.c.bf16 %v1937_v3, %v1937_v3  ;;  %v1701_v4 = vld [vmem:[%s2406_s3 + $0x4] sm:$0x3] }
  0x18   : > { %v691_v43 = vrot.slane %v687_v25, %v1975_v12  ;;  %vm2051_vm10 = vcmp.eq.s32.totalorder %v695_v33, 1  ;;  %v849_v49 = vrot.slane %v2039_v37, %v1973_v11  ;;  %v769_v50 = vrot.slane %v765_v27, %v1975_v12 }
  0x19   : > { %vm2067_vm0 = vcmp.eq.s32.totalorder %v773_v36, 1  ;;  %vm2417_vm5 = vcmp.lt.s32.totalorder %v1980_v15, 112  ;;  %v2445_v18 = vmov 0 }
  0x1a   : > { %1777 = vrot.lane.b32.xlu0 %v1771_v5, %s1864_s13  ;;  %1787 = vrot.lane.b32.xlu1 %v1771_v5, %s1865_s14 }
  0x1e   : > { %1792 = vrot.lane.b32.xlu0 %v1771_v5, %s1866_s15  ;;  %1797 = vrot.lane.b32.xlu1 %v1771_v5, %s1867_s16 }
  0x22   : > { %1802 = vrot.lane.b32.xlu0 %v1771_v5, %s1868_s17  ;;  %1807 = vrot.lane.b32.xlu1 %v1771_v5, %s1869_s18 }
  0x26   : > { %990 = vperm.xlu0 %1811, %v987_v6  }
  0x88   : > { %v1773_v38 = vpop.permute.xlu0 %1772  ;;  %v1783_v39 = vpop.permute.xlu1 %1782 }
  0x89   : > { %v1775_v44 = vunpack.i.h.bf16 %v1773_v38  ;;  %v1774_v45 = vunpack.i.l.bf16 %v1773_v38  ;;  %v1785_v46 = vunpack.i.h.bf16 %v1783_v39  ;;  %v1784_v47 = vunpack.i.l.bf16 %v1783_v39 }
  0x8b   : > { %v349_v51 = vsel %vm2413_vm8, %v1774_v45, %v1775_v44  ;;  %v475_v52 = vsel %vm2412_vm12, %v1784_v47, %v1785_v46  ;;  %v476_v53 = vsel %vm2412_vm12, %v1785_v46, %v1784_v47  ;;  %v350_v54 = vsel %vm2413_vm8, %v1775_v44, %v1774_v45  ;;  %vm917_vm8 = vmand %vm763_vm6, %vm477_vm1 }
  0x8c   : > { %v1778_v56 = vpop.permute.xlu0 %1777  ;;  %v363_v57 = vsel %vm2004_vm11, %v349_v51, 0.0  ;;  %v491_v58 = vsel %vm2009_vm13, %v475_v52, 0.0  ;;  %v362_v59 = vsel %vm2013_vm14, %v350_v54, 0.0  ;;  %v1788_v60 = vpop.permute.xlu1 %1787  ;;  %v490_v61 = vsel %vm2031_vm4, %v476_v53, 0.0  ;;  %v341_v51 = vld [vmem:[%s2406_s3] sm:$0x3] }
  0x8d   : > { %vm2079_vm12 = vcmp.eq.s32.totalorder %v691_v43, 1  ;;  %v1780_v63 = vunpack.i.h.bf16 %v1778_v56  ;;  %v1779_v2 = vunpack.i.l.bf16 %v1778_v56  ;;  %v367_v5 = vpack.c.bf16 %v363_v57, %v363_v57 }
  0x8e   : > { %v366_v6 = vpack.c.bf16 %v362_v59, %v362_v59  ;;  %v1790_v7 = vunpack.i.h.bf16 %v1788_v60  ;;  %v1789_v10 = vunpack.i.l.bf16 %v1788_v60  ;;  %v495_v13 = vpack.c.bf16 %v491_v58, %v491_v58 }
  0x8f   : > { %v494_v14 = vpack.c.bf16 %v490_v61, %v490_v61  ;;  %1697 = vmatprep.subr.msk.bf16.mxu0 %vm2416_vm9, %v367_v5  ;;  %vm2443_vm4 = vcmp.lt.s32.totalorder %v1980_v15, 17  ;;  %v2095_v17 = vsel %vm917_vm8, 1, %v1861_v0  ;;  %vm2097_vm1 = vcmp.eq.s32.totalorder %v769_v50, 1 }
  0x90   : > { %v374_v16 = vsel %vm2416_vm9, %v366_v6, 0  ;;  %v323_v8 = vsel %vm2443_vm4, %v1779_v2, %v1780_v63  ;;  %vm2444_vm14 = vmmov %vm2443_vm4  ;;  %v2446_v18 = vsel %vm2097_vm1, 4294967295, %v2445_v18  ;;  %vm2447_vm6 = vcmp.lt.s32.totalorder %v1980_v15, 1  ;;  %v1793_v24 = vpop.permute.xlu0 %1792  ;;  %v1798_v25 = vpop.permute.xlu1 %1797 }
  0x91   : > { %v324_v9 = vsel %vm2444_vm14, %v1780_v63, %v1779_v2  ;;  %394 = vmatpush1.bf16.msra.mxu0 %v374_v16  ;;  %v340_v20 = vsel %vm2017_vm15, %v323_v8, 0.0  ;;  %v553_v21 = vsel %vm2447_vm6, %v1789_v10, %v1790_v7  ;;  %vm2448_vm14 = vmmov %vm2447_vm6  ;;  %v500_v36 = vsel %vm2416_vm9, %v494_v14, 0 }
  0x92   : > { %v554_v22 = vsel %vm2448_vm14, %v1790_v7, %v1789_v10  ;;  %v339_v23 = vsel %vm2022_vm2, %v324_v9, 0.0  ;;  %v343_v26 = vpack.c.bf16 %v340_v20, %v340_v20  ;;  %v567_v27 = vsel %vm2027_vm3, %v553_v21, 0.0  ;;  %1702 = vmatprep.subr.msk.bf16.mxu0 %vm2416_vm9, %v495_v13 }
  0x93   : > { %v342_v33 = vpack.c.bf16 %v339_v23, %v339_v23  ;;  %v571_v38 = vpack.c.bf16 %v567_v27, %v567_v27  ;;  %v1795_v39 = vunpack.i.h.bf16 %v1793_v24  ;;  %v1794_v43 = vunpack.i.l.bf16 %v1793_v24 }
  0x94   : > { %v566_v44 = vsel %vm2041_vm7, %v554_v22, 0.0  ;;  %vm2449_vm8 = vcmask 31744   ;;  %1699 = vmatprep.subr.msk.bf16.mxu1 %vm2416_vm9, %v343_v26  ;;  %v1800_v47 = vunpack.i.h.bf16 %v1798_v25  ;;  %v1799_v50 = vunpack.i.l.bf16 %v1798_v25  ;;  %v1803_v56 = vpop.permute.xlu0 %1802  ;;  %v1808_v57 = vpop.permute.xlu1 %1807  ;;  %v1704_v22 = vld [vmem:[%s2406_s3 + $0x6] sm:$0x3] }
  0x95   : > { %1698 = vmatmul.mubr.msk.bf16.vlgmr.msra.gmra.mxu0 %vm2449_vm8, %v1696_v19  ;;  %v424_v45 = vsel %vm2416_vm9, %v342_v33, 0  ;;  %v570_v46 = vpack.c.bf16 %v566_v44, %v566_v44  ;;  %vm2450_vm4 = vcmp.lt.s32.totalorder %v1980_v15, 127  ;;  %vm2128_vm14 = vcmp.eq.s32.totalorder %v849_v49, 1  ;;  %v1707_v33 = vld [vmem:[%s2406_s3 + $0x8] sm:$0x3] }
  0x96   : > { %444 = vmatpush1.bf16.msra.mxu1 %v424_v45  ;;  %520 = vmatpush1.bf16.msra.mxu0 %v500_v36  ;;  %v685_v52 = vsel %vm2450_vm4, %v1794_v43, %v1795_v39  ;;  %vm2451_vm6 = vmmov %vm2450_vm4  ;;  %v2452_v54 = vmov 0  ;;  %v845_v58 = vrot.slane %v2039_v37, %v1975_v12  ;;  %vm2454_vm8 = vcmp.lt.s32.totalorder %v1980_v15, 113  ;;  %v1710_v44 = vld [vmem:[%s2406_s3 + $0xa] sm:$0x3] }
  0x97   : > { %v686_v53 = vsel %vm2451_vm6, %v1795_v39, %v1794_v43  ;;  %v2453_v54 = vsel %vm2128_vm14, 4294967295, %v2452_v54  ;;  %537 = vmatprep.mubr.bf16.mxu0 %v1861_v0  ;;  %1705 = vmatprep.subr.msk.bf16.mxu1 %vm2416_vm9, %v571_v38  ;;  %v576_v60 = vsel %vm2416_vm9, %v570_v46, 0  ;;  %v762_v49 = vsel %vm2454_vm8, %v1800_v47, %v1799_v50  ;;  %vm2456_vm6 = vmmov %vm2454_vm8 }
  0x98   : > { %v699_v59 = vsel %vm2051_vm10, %v686_v53, 0.0  ;;  %v926_v61 = vrot.slane %v2095_v17, %v1973_v11  ;;  %1708 = vmatprep.subr.msk.bf16.mxu0 %vm2416_vm9, %v627_v41  ;;  %v777_v37 = vsel %vm2067_vm0, %v762_v49, 0.0  ;;  %v1805_v2 = vunpack.i.h.bf16 %v1803_v56 }
  0x99   : > { %v703_v63 = vpack.c.bf16 %v699_v59, %v699_v59  ;;  %v1804_v5 = vunpack.i.l.bf16 %v1803_v56  ;;  %vm2455_vm4 = vcmask 31744   ;;  %v761_v6 = vsel %vm2456_vm6, %v1799_v50, %v1800_v47  ;;  %v1713_v47 = vld [vmem:[%s2406_s3 + $0xc] sm:$0x3] }
  0x9a   : > { %1700 = vmatmul.mubr.msk.bf16.vlgmr.msra.gmra.mxu1 %vm2455_vm4, %v341_v51  ;;  %v698_v7 = vsel %vm2079_vm12, %v685_v52, 0.0  ;;  %v1810_v11 = vunpack.i.h.bf16 %v1808_v57  ;;  %v1809_v10 = vunpack.i.l.bf16 %v1808_v57  ;;  %v632_v13 = vsel %vm2416_vm9, %v626_v42, 0  ;;  %v1716_v51 = vld [vmem:[%s2406_s3 + $0xe] sm:$0x3]  ;;  %v1719_v52 = vld [vmem:[%s2406_s3 + $0x10] sm:$0x3] }
  0x9b   : > { %596 = vmatpush1.bf16.msra.mxu1 %v576_v60  ;;  %613 = vmatprep.mubr.bf16.mxu1 %v1861_v0  ;;  %v840_v41 = vsel %vm2417_vm5, %v1805_v2, %v1804_v5  ;;  %v702_v14 = vpack.c.bf16 %v698_v7, %v698_v7  ;;  %v781_v16 = vpack.c.bf16 %v777_v37, %v777_v37  ;;  %v776_v9 = vsel %vm2097_vm1, %v761_v6, 0.0 }
  0x9c   : > { %1711 = vmatprep.subr.msk.bf16.mxu1 %vm2416_vm9, %v703_v63  ;;  %v853_v8 = vsel %vm2128_vm14, %v840_v41, 0.0  ;;  %vm2170_vm4 = vcmp.eq.s32.totalorder %v845_v58, 1  ;;  %v2457_v19 = vmov 0  ;;  %vm2459_vm6 = vcmask 31744  }
  0x9d   : > { %v2458_v19 = vsel %vm2170_vm4, 4294967295, %v2457_v19  ;;  %1703 = vmatmul.mubr.msk.bf16.vlgmr.msra.gmra.mxu0 %vm2459_vm6, %v1701_v4  ;;  %v839_v3 = vsel %vm2417_vm5, %v1804_v5, %v1805_v2  ;;  %vm2177_vm8 = vcmp.eq.s32.totalorder %v926_v61, 1  ;;  %vm2462_vm9 = vcmp.lt.s32.totalorder %v1980_v15, 111 }
  0x9e   : > { %v916_v20 = vsel %vm2462_vm9, %v1810_v11, %v1809_v10  ;;  %v922_v21 = vrot.slane %v2095_v17, %v1975_v12  ;;  %652 = vmatpush1.bf16.msra.mxu0 %v632_v13  ;;  %669 = vmatprep.mubr.bf16.mxu0 %v1861_v0  ;;  %vm2463_vm6 = vcmask 1041408   ;;  %v780_v24 = vpack.c.bf16 %v776_v9, %v776_v9 }
  0x9f   : > { %v708_v23 = vsel %vm2463_vm6, %v702_v14, 0  ;;  %vm2464_vm5 = vmmov %vm2463_vm6  ;;  %v857_v25 = vpack.c.bf16 %v853_v8, %v853_v8  ;;  %v930_v26 = vsel %vm2177_vm8, %v916_v20, 0.0  ;;  %v852_v27 = vsel %vm2170_vm4, %v839_v3, 0.0 }
  0xa0   : > { %1714 = vmatprep.subr.msk.bf16.mxu0 %vm2464_vm5, %v781_v16  ;;  %vm2465_vm9 = vcmask 31744   ;;  %vm2466_vm1 = vcmp.lt.s32.totalorder %v1980_v15, 111  ;;  %vm2198_vm14 = vcmp.eq.s32.totalorder %v922_v21, 1  ;;  %v786_v36 = vsel %vm2464_vm5, %v780_v24, 0  ;;  %vm2469_vm6 = vmmov %vm2464_vm5 }
  0xa1   : > { %v915_v12 = vsel %vm2466_vm1, %v1809_v10, %v1810_v11  ;;  %v856_v38 = vpack.c.bf16 %v852_v27, %v852_v27  ;;  %v934_v39 = vpack.c.bf16 %v930_v26, %v930_v26  ;;  %vm2470_vm1 = vmmov %vm2465_vm9  ;;  %v1576_v17 = vpack.c.bf16 %v1932_v1, %v1932_v1 }
  0xa2   : > { %1706 = vmatmul.mubr.msk.bf16.vlgmr.msra.gmra.mxu1 %vm2465_vm9, %v1704_v22  ;;  %v929_v43 = vsel %vm2198_vm14, %v915_v12, 0.0  ;;  %vm2471_vm9 = vmmov %vm2464_vm5 }
  0xa3   : > { %728 = vmatpush1.bf16.msra.mxu1 %v708_v23  ;;  %745 = vmatprep.mubr.bf16.mxu1 %v1861_v0  ;;  %v862_v45 = vsel %vm2471_vm9, %v856_v38, 0  ;;  %vm2472_vm4 = vmmov %vm2464_vm5  ;;  %v933_v46 = vpack.c.bf16 %v929_v43, %v929_v43 }
  0xa4   : > { %1717 = vmatprep.subr.msk.bf16.mxu1 %vm2469_vm6, %v857_v25  ;;  %vm2473_vm5 = vmmov %vm2470_vm1 }
  0xa5   : > { %1709 = vmatmul.mubr.msk.bf16.vlgmr.msra.gmra.mxu0 %vm2470_vm1, %v1707_v33  ;;  %vm2474_vm6 = vmmov %vm2472_vm4 }
  0xa6   : > { %806 = vmatpush1.bf16.msra.mxu0 %v786_v36  ;;  %823 = vmatprep.mubr.bf16.mxu0 %v1861_v0  ;;  %v939_v50 = vsel %vm2474_vm6, %v933_v46, 0  ;;  %vm2476_vm9 = vmmov %vm2470_vm1 }
  0xa7   : > { %1720 = vmatprep.subr.msk.bf16.mxu0 %vm2472_vm4, %v934_v39  ;;  %vm2475_vm4 = vmmov %vm2470_vm1 }
  0xaa   : > { %1712 = vmatmul.mubr.msk.bf16.vlgmr.msra.gmra.mxu1 %vm2473_vm5, %v1710_v44 }
  0xab   : > { %882 = vmatpush1.bf16.msra.mxu1 %v862_v45  ;;  %899 = vmatprep.mubr.bf16.mxu1 %v1861_v0 }
  0xad   : > { %1715 = vmatmul.mubr.msk.bf16.vlgmr.msra.gmra.mxu0 %vm2470_vm1, %v1713_v47  ;;  %vm2477_vm1 = vcmp.lt.s32.totalorder %v1980_v15, 15 }
  0xae   : > { %959 = vmatpush1.bf16.msra.mxu0 %v939_v50  ;;  %976 = vmatprep.mubr.bf16.mxu0 %v1861_v0 }
  0xb2   : > { %1718 = vmatmul.mubr.msk.bf16.vlgmr.msra.gmra.mxu1 %vm2475_vm4, %v1716_v51  ;;  %v991_v51 = vpop.permute.xlu0 %990  ;;  %vm2478_vm4 = vmmov %vm2477_vm1 }
  0xb3   : > { %1065 = vmatprep.mubr.bf16.mxu1 %v1861_v0 }
  0xb5   : > { %1721 = vmatmul.mubr.msk.bf16.vlgmr.msra.gmra.mxu0 %vm2476_vm9, %v1719_v52  ;;  %vm2479_vm9 = vcmp.lt.s32.totalorder %v1980_v15, 16 }
  0xb6   : > { %1115 = vmatprep.mubr.bf16.mxu0 %v1861_v0 }
 0x155   : > { %v413_v53 = vpop.f32.mrf.mxu0 }
 0x157   : > { %v415_v56 = vpop.f32.mrf.mxu0 }
 0x159   : > { %v417_v57 = vpop.f32.mrf.mxu0 }
 0x15a   : > { %v463_v58 = vpop.f32.mrf.mxu1 }
 0x15b   : > { %v418_v59 = vpop.f32.mrf.mxu0  ;;  %v464_v13 = vadd.f32 %v463_v58, %v413_v53 }
 0x15c   : > { %v465_v60 = vpop.f32.mrf.mxu1 }
 0x15d   : > { %v539_v61 = vpop.f32.mrf.mxu0  ;;  %v466_v8 = vadd.f32 %v465_v60, %v415_v56 }
 0x15e   : > { %v467_v49 = vpop.f32.mrf.mxu1  ;;  %v546_v9 = vadd.f32 %v539_v61, %v464_v13 }
 0x15f   : > { %v541_v63 = vpop.f32.mrf.mxu0 }
 0x160   : > { %v468_v37 = vpop.f32.mrf.mxu1  ;;  %v547_v21 = vadd.f32 %v541_v63, %v466_v8 }
 0x161   : > { %v543_v2 = vpop.f32.mrf.mxu0 }
 0x162   : > { %v615_v5 = vpop.f32.mrf.mxu1 }
 0x163   : > { %v544_v6 = vpop.f32.mrf.mxu0  ;;  %v622_v22 = vadd.f32 %v615_v5, %v546_v9 }
 0x164   : > { %v617_v7 = vpop.f32.mrf.mxu1 }
 0x165   : > { %v671_v10 = vpop.f32.mrf.mxu0  ;;  %v623_v25 = vadd.f32 %v617_v7, %v547_v21 }
 0x166   : > { %v619_v11 = vpop.f32.mrf.mxu1  ;;  %v678_v26 = vadd.f32 %v671_v10, %v622_v22  ;;  %v1564_v10 = vld [vmem:[%s2409_s6] sm:$0xff] }
 0x167   : > { %v673_v41 = vpop.f32.mrf.mxu0 }
 0x168   : > { %v620_v4 = vpop.f32.mrf.mxu1  ;;  %v679_v33 = vadd.f32 %v673_v41, %v623_v25 }
 0x169   : > { %v675_v14 = vpop.f32.mrf.mxu0 }
 0x16a   : > { %v747_v16 = vpop.f32.mrf.mxu1 }
 0x16b   : > { %v676_v3 = vpop.f32.mrf.mxu0  ;;  %v754_v36 = vadd.f32 %v747_v16, %v678_v26 }
 0x16c   : > { %v749_v20 = vpop.f32.mrf.mxu1 }
 0x16d   : > { %v825_v24 = vpop.f32.mrf.mxu0  ;;  %v755_v43 = vadd.f32 %v749_v20, %v679_v33 }
 0x16e   : > { %v751_v23 = vpop.f32.mrf.mxu1  ;;  %v832_v44 = vadd.f32 %v825_v24, %v754_v36 }
 0x16f   : > { %v827_v12 = vpop.f32.mrf.mxu0 }
 0x170   : > { %v752_v27 = vpop.f32.mrf.mxu1  ;;  %v833_v47 = vadd.f32 %v827_v12, %v755_v43 }
 0x171   : > { %v829_v38 = vpop.f32.mrf.mxu0 }
 0x172   : > { %v901_v39 = vpop.f32.mrf.mxu1 }
 0x173   : > { %v830_v45 = vpop.f32.mrf.mxu0  ;;  %v908_v50 = vadd.f32 %v901_v39, %v832_v44 }
 0x174   : > { %v903_v46 = vpop.f32.mrf.mxu1 }
 0x175   : > { %v978_v53 = vpop.f32.mrf.mxu0  ;;  %v909_v56 = vadd.f32 %v903_v46, %v833_v47 }
 0x176   : > { %v905_v52 = vpop.f32.mrf.mxu1  ;;  %v985_v57 = vadd.f32 %v978_v53, %v908_v50 }
 0x177   : > { %v980_v59 = vpop.f32.mrf.mxu0 }
 0x178   : > { %v906_v58 = vpop.f32.mrf.mxu1  ;;  %v993_v60 = vadd.f32 %v991_v51, %v985_v57  ;;  %v986_v49 = vadd.f32 %v980_v59, %v909_v56  ;;  %v1722_v56 = vld [vmem:[%s2408_s5 + $0x4] sm:$0xf] }
 0x179   : > { %v982_v61 = vpop.f32.mrf.mxu0 }
 0x17a   : > { %v997_v37 = vmul.f32 0.2, %v993_v60  ;;  %v994_v63 = vadd.f32 %v991_v51, %v986_v49  ;;  %vm995_vm5 = vcmp.gt.f32.partialorder %v993_v60, 0.0 }
 0x17b   : > { %v983_v2 = vpop.f32.mrf.mxu0 }
 0x17c   : > { %vm996_vm6 = vcmp.gt.f32.partialorder %v994_v63, 0.0  ;;  %v998_v5 = vmul.f32 0.2, %v994_v63  ;;  %v2235_v6 = vsel %vm995_vm5, %v993_v60, %v997_v37  ;;  %vm2480_vm5 = vmmov %vm2479_vm9 }
 0x17e   : > { %v2237_v7 = vsel %vm996_vm6, %v994_v63, %v998_v5  ;;  %vm2481_vm6 = vnez %v2426_v30 }
 0x17f   : > { %v1822_v11 = vpack.i.bf16 %v2237_v7, %v2235_v6  ;;  %v1255_v59 = vpack.c.bf16 %v2237_v7, %v2237_v7 }
 0x181   : > { %1823 = vrot.lane.b32.xlu0 %v1822_v11, %s1863_s12  ;;  %1813 = vrot.lane.b32.xlu1 %v1822_v11, %s1862_s11  ;;  %s1753_s11 = sshll.u32 %s2527_s28, 4 }
 0x185   : > { %1833 = vrot.lane.b32.xlu0 %v1822_v11, %s1866_s15  ;;  %1818 = vrot.lane.b32.xlu1 %v1822_v11, %s1864_s13 }
 0x189   : > { %1843 = vrot.lane.b32.xlu0 %v1822_v11, %s1868_s17  ;;  %1828 = vrot.lane.b32.xlu1 %v1822_v11, %s1865_s14  ;;  %s305_s14 = scalar_lea.vmem %s2411_s8, %s1753_s11 }
 0x18d   : > { %1567 = vperm.xlu0 %1811, %v1564_v10   ;;  %1838 = vrot.lane.b32.xlu1 %v1822_v11, %s1867_s16 }
 0x191   : > { %1848 = vrot.lane.b32.xlu1 %v1822_v11, %s1869_s18 }
 0x1f3   : > { %v1824_v4 = vpop.permute.xlu0 %1823  ;;  %v1814_v41 = vpop.permute.xlu1 %1813 }
 0x1f4   : > { %v1826_v13 = vunpack.i.h.bf16 %v1824_v4  ;;  %v1825_v14 = vunpack.i.l.bf16 %v1824_v4  ;;  %v1816_v16 = vunpack.i.h.bf16 %v1814_v41  ;;  %v1815_v8 = vunpack.i.l.bf16 %v1814_v41 }
 0x1f6   : > { %v1128_v9 = vsel %vm2477_vm1, %v1825_v14, %v1826_v13  ;;  %v1129_v3 = vsel %vm2478_vm4, %v1826_v13, %v1825_v14  ;;  %v1016_v20 = vsel %vm2479_vm9, %v1815_v8, %v1816_v16  ;;  %v1017_v21 = vsel %vm2480_vm5, %v1816_v16, %v1815_v8 }
 0x1f7   : > { %v1131_v22 = vsel %vm2009_vm13, %v1128_v9, 0.0  ;;  %v1019_v23 = vsel %vm2004_vm11, %v1016_v20, 0.0  ;;  %v1834_v24 = vpop.permute.xlu0 %1833  ;;  %v1819_v25 = vpop.permute.xlu1 %1818  ;;  %v1018_v26 = vsel %vm2481_vm6, %v1017_v21, 0.0  ;;  %vm2482_vm1 = vnez %v2434_v35  ;;  %v1727_v20 = vld [vmem:[%s2408_s5 + $0x8] sm:$0xf] }
 0x1f8   : > { %v1130_v27 = vsel %vm2482_vm1, %v1129_v3, 0.0  ;;  %v1836_v12 = vunpack.i.h.bf16 %v1834_v24  ;;  %v1835_v33 = vunpack.i.l.bf16 %v1834_v24  ;;  %v1821_v36 = vunpack.i.h.bf16 %v1819_v25 }
 0x1f9   : > { %v1820_v38 = vunpack.i.l.bf16 %v1819_v25  ;;  %v1023_v39 = vpack.c.bf16 %v1019_v23, %v1019_v23  ;;  %v1022_v43 = vpack.c.bf16 %v1018_v26, %v1018_v26  ;;  %vm2483_vm4 = vcmp.lt.s32.totalorder %v1980_v15, 127 }
 0x1fa   : > { %v1313_v29 = vsel %vm2483_vm4, %v1836_v12, %v1835_v33  ;;  %vm2484_vm13 = vcmp.lt.s32.totalorder %v1980_v15, 17  ;;  %v1135_v30 = vpack.c.bf16 %v1131_v22, %v1131_v22  ;;  %vm2486_vm9 = vcmask 1041408  }
 0x1fb   : > { %v1005_v28 = vsel %vm2484_vm13, %v1820_v38, %v1821_v36  ;;  %vm2485_vm11 = vmmov %vm2484_vm13  ;;  %1723 = vmatprep.subr.msk.bf16.mxu1 %vm2486_vm9, %v1023_v39  ;;  %v2277_v45 = vpop.permute.xlu0 %1843  ;;  %v1829_v46 = vpop.permute.xlu1 %1828  ;;  %v1134_v51 = vpack.c.bf16 %v1130_v27, %v1130_v27  ;;  %v1315_v31 = vsel %vm2051_vm10, %v1313_v29, 0.0  ;;  %vm2491_vm10 = vcmask 31744  }
 0x1fc   : > { %v1006_v44 = vsel %vm2485_vm11, %v1821_v36, %v1820_v38  ;;  %v1008_v35 = vsel %vm2017_vm15, %v1005_v28, 0.0  ;;  %vm2487_vm5 = vmmov %vm2486_vm9  ;;  %v1831_v52 = vunpack.i.h.bf16 %v1829_v46  ;;  %v1830_v53 = vunpack.i.l.bf16 %v1829_v46 }
 0x1fd   : > { %v1028_v47 = vsel %vm2487_vm5, %v1022_v43, 0  ;;  %v1007_v50 = vsel %vm2022_vm2, %v1006_v44, 0.0  ;;  %vm2488_vm15 = vmmov %vm2487_vm5  ;;  %v1011_v57 = vpack.c.bf16 %v1008_v35, %v1008_v35  ;;  %v1846_v32 = vunpack.i.h.bf16 %v2277_v45 }
 0x1fe   : > { %1048 = vmatpush1.bf16.msra.mxu1 %v1028_v47  ;;  %v1010_v58 = vpack.c.bf16 %v1007_v50, %v1007_v50  ;;  %v1845_v60 = vunpack.i.l.bf16 %v2277_v45  ;;  %vm2489_vm2 = vcmp.lt.s32.totalorder %v1980_v15, 1  ;;  %vm2492_vm1 = vmmov %vm2487_vm5  ;;  %vm2497_vm9 = vcmp.lt.s32.totalorder %v1980_v15, 113  ;;  %v1739_v47 = vld [vmem:[%s2408_s5 + $0x18] sm:$0xf] }
 0x1ff   : > { %1728 = vmatprep.subr.msk.bf16.mxu1 %vm2488_vm15, %v1135_v30  ;;  %v1192_v49 = vsel %vm2489_vm2, %v1830_v53, %v1831_v52  ;;  %vm2490_vm6 = vmmov %vm2489_vm2  ;;  %1725 = vmatprep.subr.msk.bf16.mxu0 %vm2492_vm1, %v1011_v57  ;;  %v1839_v37 = vpop.permute.xlu1 %1838  ;;  %v1319_v8 = vpack.c.bf16 %v1315_v31, %v1315_v31  ;;  %v1254_v9 = vpack.c.bf16 %v2235_v6, %v2235_v6  ;;  %vm2501_vm2 = vcmp.lt.s32.totalorder %v1980_v15, 112 }
 0x200   : > { %v1193_v61 = vsel %vm2490_vm6, %v1831_v52, %v1830_v53  ;;  %v1195_v48 = vsel %vm2027_vm3, %v1192_v49, 0.0  ;;  %vm2493_vm4 = vmmov %vm2492_vm1  ;;  %v1841_v7 = vunpack.i.h.bf16 %v1839_v37  ;;  %v1840_v11 = vunpack.i.l.bf16 %v1839_v37  ;;  %v1745_v53 = vld [vmem:[%s2408_s5 + $0x20] sm:$0xf] }
 0x201   : > { %1724 = vmatmul.mubr.msk.bf16.vlgmr.msra.gmra.mxu1 %vm2491_vm10, %v1722_v56  ;;  %v1078_v63 = vsel %vm2493_vm4, %v1010_v58, 0  ;;  %vm2494_vm13 = vmmov %vm2492_vm1  ;;  %v1194_v5 = vsel %vm2041_vm7, %v1193_v61, 0.0  ;;  %v1199_v10 = vpack.c.bf16 %v1195_v48, %v1195_v48  ;;  %vm2495_vm3 = vcmp.lt.s32.totalorder %v1980_v15, 127 }
 0x202   : > { %v1140_v2 = vsel %vm2494_vm13, %v1134_v51, 0  ;;  %1098 = vmatpush1.bf16.msra.mxu0 %v1078_v63  ;;  %v1198_v4 = vpack.c.bf16 %v1194_v5, %v1194_v5  ;;  %v1312_v41 = vsel %vm2495_vm3, %v1835_v33, %v1836_v12  ;;  %vm2496_vm11 = vmmov %vm2492_vm1  ;;  %1177 = vmatprep.mubr.bf16.mxu1 %v1861_v0  ;;  %v1377_v40 = vsel %vm2497_vm9, %v1841_v7, %v1840_v11  ;;  %v1742_v51 = vld [vmem:[%s2408_s5 + $0x1c] sm:$0xf] }
 0x203   : > { %1160 = vmatpush1.bf16.msra.mxu1 %v1140_v2  ;;  %vm2498_vm7 = vmmov %vm2492_vm1  ;;  %v1379_v14 = vsel %vm2067_vm0, %v1377_v40, 0.0  ;;  %v1849_v16 = vpop.permute.xlu1 %1848  ;;  %v1441_v3 = vsel %vm2501_vm2, %v1846_v32, %v1845_v60  ;;  %v1314_v55 = vsel %vm2079_vm12, %v1312_v41, 0.0  ;;  %v1260_v24 = vsel %vm2492_vm1, %v1254_v9, 0 }
 0x204   : > { %1734 = vmatprep.subr.msk.bf16.mxu1 %vm2496_vm11, %v1255_v59  ;;  %1731 = vmatprep.subr.msk.bf16.mxu0 %vm2498_vm7, %v1199_v10  ;;  %vm2499_vm5 = vmmov %vm2492_vm1  ;;  %v1851_v22 = vunpack.i.h.bf16 %v1849_v16  ;;  %v1850_v23 = vunpack.i.l.bf16 %v1849_v16  ;;  %v1383_v6 = vpack.c.bf16 %v1379_v14, %v1379_v14  ;;  %v1318_v25 = vpack.c.bf16 %v1314_v55, %v1314_v55 }
 0x205   : > { %v1204_v13 = vsel %vm2499_vm5, %v1198_v4, 0  ;;  %vm2500_vm15 = vmmov %vm2491_vm10  ;;  %vm2504_vm4 = vnez %v2453_v54  ;;  %vm2505_vm12 = vnez %v2446_v18  ;;  %vm2507_vm3 = vcmp.lt.s32.totalorder %v1980_v15, 111  ;;  %v1733_v18 = vld [vmem:[%s2408_s5 + $0x10] sm:$0xf] }
 0x206   : > { %1726 = vmatmul.mubr.msk.bf16.vlgmr.msra.gmra.mxu0 %vm2500_vm15, %v1009_v34  ;;  %vm2502_vm0 = vmmov %vm2497_vm9  ;;  %v1443_v26 = vsel %vm2504_vm4, %v1441_v3, 0.0  ;;  %v1505_v33 = vsel %vm2507_vm3, %v1851_v22, %v1850_v23  ;;  %vm2511_vm5 = vnez %v2458_v19  ;;  %v1574_v28 = vcombine.high %v1932_v1, %v1932_v1  ;;  %v1736_v19 = vld [vmem:[%s2408_s5 + $0x14] sm:$0xf]  ;;  %v1572_v1 = vld [vmem:[%s2410_s7] sm:$0xf] }
 0x207   : > { %1224 = vmatpush1.bf16.msra.mxu0 %v1204_v13  ;;  %1241 = vmatprep.mubr.bf16.mxu0 %v1861_v0  ;;  %v1376_v21 = vsel %vm2502_vm0, %v1840_v11, %v1841_v7  ;;  %vm2503_vm6 = vmmov %vm2492_vm1  ;;  %v1447_v36 = vpack.c.bf16 %v1443_v26, %v1443_v26  ;;  %v1507_v39 = vsel %vm2177_vm8, %v1505_v33, 0.0 }
 0x208   : > { %1737 = vmatprep.subr.msk.bf16.mxu0 %vm2503_vm6, %v1319_v8  ;;  %v1378_v27 = vsel %vm2505_vm12, %v1376_v21, 0.0  ;;  %vm2506_vm13 = vmmov %vm2501_vm2  ;;  %v1511_v42 = vpack.c.bf16 %v1507_v39, %v1507_v39  ;;  %v1577_v35 = vpack.c.bf16 %v1574_v28, %v1574_v28 }
 0x209   : > { %1729 = vmatmul.mubr.msk.bf16.vlgmr.msra.gmra.mxu1 %vm2491_vm10, %v1727_v20  ;;  %v1440_v12 = vsel %vm2506_vm13, %v1845_v60, %v1846_v32  ;;  %vm2508_vm11 = vmmov %vm2492_vm1  ;;  %v1382_v38 = vpack.c.bf16 %v1378_v27, %v1378_v27 }
 0x20a   : > { %1280 = vmatpush1.bf16.msra.mxu1 %v1260_v24  ;;  %1297 = vmatprep.mubr.bf16.mxu1 %v1861_v0  ;;  %vm2509_vm9 = vmmov %vm2491_vm10  ;;  %v1442_v43 = vsel %vm2511_vm5, %v1440_v12, 0.0 }
 0x20b   : > { %1740 = vmatprep.subr.msk.bf16.mxu1 %vm2508_vm11, %v1383_v6  ;;  %vm2510_vm7 = vmmov %vm2492_vm1  ;;  %v1446_v30 = vpack.c.bf16 %v1442_v43, %v1442_v43 }
 0x20c   : > { %v1324_v54 = vsel %vm2510_vm7, %v1318_v25, 0  ;;  %vm2512_vm15 = vmmov %vm2507_vm3 }
 0x20d   : > { %v1504_v29 = vsel %vm2512_vm15, %v1850_v23, %v1851_v22  ;;  %vm2513_vm2 = vmmov %vm2492_vm1 }
 0x20e   : > { %1732 = vmatmul.mubr.msk.bf16.vlgmr.msra.gmra.mxu0 %vm2509_vm9, %v1730_v62  ;;  %vm2514_vm8 = vmmov %vm2509_vm9  ;;  %v1506_v15 = vsel %vm2198_vm14, %v1504_v29, 0.0 }
 0x20f   : > { %1344 = vmatpush1.bf16.msra.mxu0 %v1324_v54  ;;  %1361 = vmatprep.mubr.bf16.mxu0 %v1861_v0  ;;  %vm2515_vm0 = vmmov %vm2492_vm1  ;;  %v1510_v46 = vpack.c.bf16 %v1506_v15, %v1506_v15 }
 0x210   : > { %1743 = vmatprep.subr.msk.bf16.mxu0 %vm2513_vm2, %v1447_v36  ;;  %v1388_v44 = vsel %vm2515_vm0, %v1382_v38, 0  ;;  %vm2516_vm6 = vmmov %vm2515_vm0 }
 0x211   : > { %1735 = vmatmul.mubr.msk.bf16.vlgmr.msra.gmra.mxu1 %vm2514_vm8, %v1733_v18  ;;  %vm2517_vm10 = vmmov %vm2514_vm8  ;;  %v1568_v18 = vpop.permute.xlu0 %1567 }
 0x212   : > { %1408 = vmatpush1.bf16.msra.mxu1 %v1388_v44  ;;  %1425 = vmatprep.mubr.bf16.mxu1 %v1861_v0  ;;  %vm2518_vm1 = vmmov %vm2515_vm0 }
 0x213   : > { %1746 = vmatprep.subr.msk.bf16.mxu1 %vm2516_vm6, %v1511_v42  ;;  %v1452_v45 = vsel %vm2518_vm1, %v1446_v30, 0  ;;  %vm2519_vm4 = vmmov %vm2515_vm0 }
 0x214   : > { %vm2520_vm14 = vmmov %vm2514_vm8 }
 0x215   : > { %vm2521_vm12 = vmmov %vm2515_vm0 }
 0x216   : > { %1738 = vmatmul.mubr.msk.bf16.vlgmr.msra.gmra.mxu0 %vm2517_vm10, %v1736_v19  ;;  %v1516_v50 = vsel %vm2521_vm12, %v1510_v46, 0  ;;  %vm2522_vm13 = vmmov %vm2515_vm0 }
 0x217   : > { %1472 = vmatpush1.bf16.msra.mxu0 %v1452_v45  ;;  %1489 = vmatprep.mubr.bf16.mxu0 %v1861_v0  ;;  %v1584_v52 = vsel %vm2522_vm13, %v1576_v17, 0  ;;  %vm2523_vm3 = vmmov %vm2514_vm8 }
 0x218   : > { %1748 = vmatprep.subr.msk.bf16.mxu0 %vm2519_vm4, %v1577_v35  ;;  %vm2524_vm11 = vmmov %vm2523_vm3 }
 0x219   : > { %1741 = vmatmul.mubr.msk.bf16.vlgmr.msra.gmra.mxu1 %vm2520_vm14, %v1739_v47  ;;  %vm2525_vm9 = vmmov %vm2523_vm3 }
 0x21a   : > { %1536 = vmatpush1.bf16.msra.mxu1 %v1516_v50  ;;  %1553 = vmatprep.mubr.bf16.mxu1 %v1861_v0 }
 0x21e   : > { %1744 = vmatmul.mubr.msk.bf16.vlgmr.msra.gmra.mxu0 %vm2523_vm3, %v1742_v51 }
 0x21f   : > { %1604 = vmatpush1.bf16.msra.mxu0 %v1584_v52  ;;  %1621 = vmatprep.mubr.bf16.mxu0 %v1861_v0 }
 0x221   : > { %1747 = vmatmul.mubr.msk.bf16.vlgmr.msra.gmra.mxu1 %vm2524_vm11, %v1745_v53 }
 0x226   : > { %1749 = vmatmul.mubr.msk.bf16.vlgmr.msra.gmra.mxu0 %vm2525_vm9, %v1572_v1 }
 0x2c1   : > { %v1067_v56 = vpop.f32.mrf.mxu1 }
 0x2c3   : > { %v1069_v31 = vpop.f32.mrf.mxu1 }
 0x2c5   : > { %v1071_v57 = vpop.f32.mrf.mxu1 }
 0x2c6   : > { %v1117_v58 = vpop.f32.mrf.mxu0 }
 0x2c7   : > { %v1072_v59 = vpop.f32.mrf.mxu1  ;;  %v1118_v10 = vadd.f32 %v1117_v58, %v1067_v56 }
 0x2c8   : > { %v1119_v32 = vpop.f32.mrf.mxu0 }
 0x2c9   : > { %v1179_v49 = vpop.f32.mrf.mxu1  ;;  %v1120_v40 = vadd.f32 %v1119_v32, %v1069_v31 }
 0x2ca   : > { %v1121_v60 = vpop.f32.mrf.mxu0  ;;  %v1186_v13 = vadd.f32 %v1179_v49, %v1118_v10 }
 0x2cb   : > { %v1181_v48 = vpop.f32.mrf.mxu1 }
 0x2cc   : > { %v1122_v61 = vpop.f32.mrf.mxu0  ;;  %v1187_v8 = vadd.f32 %v1181_v48, %v1120_v40 }
 0x2cd   : > { %v1183_v37 = vpop.f32.mrf.mxu1 }
 0x2ce   : > { %v1243_v0 = vpop.f32.mrf.mxu0 }
 0x2cf   : > { %v1184_v63 = vpop.f32.mrf.mxu1  ;;  %v1250_v9 = vadd.f32 %v1243_v0, %v1186_v13 }
 0x2d0   : > { %v1245_v2 = vpop.f32.mrf.mxu0 }
 0x2d1   : > { %v1299_v7 = vpop.f32.mrf.mxu1  ;;  %v1251_v55 = vadd.f32 %v1245_v2, %v1187_v8 }
 0x2d2   : > { %v1247_v5 = vpop.f32.mrf.mxu0  ;;  %v1306_v21 = vadd.f32 %v1299_v7, %v1250_v9 }
 0x2d3   : > { %v1301_v34 = vpop.f32.mrf.mxu1 }
 0x2d4   : > { %v1248_v11 = vpop.f32.mrf.mxu0  ;;  %v1307_v6 = vadd.f32 %v1301_v34, %v1251_v55 }
 0x2d5   : > { %v1303_v4 = vpop.f32.mrf.mxu1 }
 0x2d6   : > { %v1363_v41 = vpop.f32.mrf.mxu0 }
 0x2d7   : > { %v1304_v14 = vpop.f32.mrf.mxu1  ;;  %v1370_v24 = vadd.f32 %v1363_v41, %v1306_v21 }
 0x2d8   : > { %v1365_v16 = vpop.f32.mrf.mxu0 }
 0x2d9   : > { %v1427_v20 = vpop.f32.mrf.mxu1  ;;  %v1371_v62 = vadd.f32 %v1365_v16, %v1307_v6 }
 0x2da   : > { %v1367_v3 = vpop.f32.mrf.mxu0  ;;  %v1434_v27 = vadd.f32 %v1427_v20, %v1370_v24 }
 0x2db   : > { %v1429_v23 = vpop.f32.mrf.mxu1 }
 0x2dc   : > { %v1368_v22 = vpop.f32.mrf.mxu0  ;;  %v1435_v54 = vadd.f32 %v1429_v23, %v1371_v62 }
 0x2dd   : > { %v1431_v25 = vpop.f32.mrf.mxu1 }
 0x2de   : > { %v1491_v26 = vpop.f32.mrf.mxu0 }
 0x2df   : > { %v1432_v12 = vpop.f32.mrf.mxu1  ;;  %v1498_v36 = vadd.f32 %v1491_v26, %v1434_v27 }
 0x2e0   : > { %v1493_v33 = vpop.f32.mrf.mxu0 }
 0x2e1   : > { %v1555_v39 = vpop.f32.mrf.mxu1  ;;  %v1499_v43 = vadd.f32 %v1493_v33, %v1435_v54 }
 0x2e2   : > { %v1495_v38 = vpop.f32.mrf.mxu0  ;;  %v1562_v29 = vadd.f32 %v1555_v39, %v1498_v36 }
 0x2e3   : > { %v1557_v42 = vpop.f32.mrf.mxu1 }
 0x2e4   : > { %v1496_v28 = vpop.f32.mrf.mxu0  ;;  %v1570_v44 = vadd.f32 %v1568_v18, %v1562_v29  ;;  %v1563_v30 = vadd.f32 %v1557_v42, %v1499_v43 }
 0x2e5   : > { %v1559_v19 = vpop.f32.mrf.mxu1 }
 0x2e6   : > { %v1623_v15 = vpop.f32.mrf.mxu0  ;;  %v1571_v35 = vadd.f32 %v1568_v18, %v1563_v30  ;;  %v1578_v45 = vmul.f32 0.1, %v1570_v44 }
 0x2e7   : > { %v1560_v46 = vpop.f32.mrf.mxu1 }
 0x2e8   : > { %v1625_v47 = vpop.f32.mrf.mxu0  ;;  %v1624_v17 = vadd.f32 %v1623_v15, %v1578_v45  ;;  %v1579_v50 = vmul.f32 0.1, %v1571_v35 }
 0x2ea   : > { %v1627_v51 = vpop.f32.mrf.mxu0  ;;  %1630 = vst [vmem:[%s305_s14] sm:$0xff] %v1624_v17  ;;  %v1626_v52 = vadd.f32 %v1625_v47, %v1579_v50 }
 0x2ec   : > { %v1628_v53 = vpop.f32.mrf.mxu0  ;;  %1631 = vst [vmem:[%s305_s14 + $0x8] sm:$0xff] %v1626_v52 }
 0x2ed PF: > { %s18_s27 = sadd.s32 1, %s1859_s27  }
 0x2ee   : > { %p15_p4 = scmp.ge.s32.totalorder %s18_s27, 4  }
 0x2f0   :  { %17 = sbr.rel (!%p15_p4) target bundleno = 1 (0x1), region = 98 }

</bundles_post_ra>
